<compile_context>
chip_gen: v7x
topology: tpu7x:2x2x1
jax: 0.10.0
libtpu: 0.0.40
codegen_flags: <defaults>
</compile_context>

<pallas_src>
import functools
import numpy as np
import jax
import jax.numpy as jnp
from jax import lax
from jax.experimental import pallas as pl
from jax.experimental.pallas import tpu as pltpu


def _round_up(x, m):
    return (x + m - 1) // m * m


def _tpu_generation():
    try:
        kind = jax.devices()[0].device_kind.lower()
    except Exception:
        return 6
    for g in ('7', '6', '5', '4'):
        if g in kind:
            return int(g)
    return 6


_GEN = _tpu_generation()

# Runtime-probed flag: True -> fused-tap conv GEMM (im2col folded into the
# kernel as static shifted row-slices of the resident input); False -> XLA
# im2col patches fallback (same kernel, single tap).
_USE_FUSED = [True]


# ----------------------------------------------------------------------------
# Pallas fused conv-GEMM kernel: bf16 operands, f32 accumulation on the MXU,
# im2col taps as static shifted slices, fused bias + optional ReLU epilogue.
# ----------------------------------------------------------------------------
def _conv_kernel(x_ref, w_ref, b_ref, o_ref, *, taps, relu):
    """o = act( sum_s x[shift_s : shift_s + M, :] @ w[s*C:(s+1)*C, :] + bias )."""
    mp = o_ref.shape[0]
    c = x_ref.shape[1]
    acc = None
    for s, shift in enumerate(taps):          # static, fully unrolled
        a = x_ref[shift:shift + mp, :]        # static sublane-offset slice
        b = w_ref[s * c:(s + 1) * c, :]
        d = jnp.dot(a, b, preferred_element_type=jnp.float32)
        acc = d if acc is None else acc + d
    acc = acc + b_ref[...]
    if relu:
        acc = jnp.maximum(acc, 0.0)
    o_ref[...] = acc.astype(o_ref.dtype)


def _pick_tn(n_out, ktot, gen):
    # Largest lane-dense output-channel tile keeping one bf16 weight block in
    # budget: v5e/v6e (128 MiB VMEM) allow ~5 MiB blocks (fewer grid steps);
    # v7x (64 MiB) ~2.5 MiB, and expose >=2 blocks for its second TensorCore.
    wmax = (5 << 20) if gen < 7 else (5 << 19)
    tn = n_out
    while tn > 128 and ktot * tn * 2 > wmax:
        tn //= 2
    if gen >= 7 and n_out >= 256 and n_out // tn < 2:
        tn = max(128, tn // 2)
    return tn


def _conv_gemm(x2d, wm, bias, *, taps, mp, relu, out_dtype):
    rx, c = x2d.shape
    ktot, n_out = wm.shape
    assert ktot == len(taps) * c
    tn = _pick_tn(n_out, ktot, _GEN)
    nt = n_out // tn
    ob = jnp.dtype(out_dtype).itemsize
    need = (2 * rx * c * 2 + 2 * ktot * tn * 2 + 2 * mp * tn * ob
            + mp * tn * 4 + 2 * tn * 4)
    vmem_limit = int(min(48 << 20, max(8 << 20, 2 * need)))
    return pl.pallas_call(
        functools.partial(_conv_kernel, taps=taps, relu=relu),
        out_shape=jax.ShapeDtypeStruct((mp, n_out), out_dtype),
        grid=(nt,),
        in_specs=[
            pl.BlockSpec((rx, c), lambda j: (0, 0)),      # whole input resident
            pl.BlockSpec((ktot, tn), lambda j: (0, j)),   # per-tile weight slab
            pl.BlockSpec((1, tn), lambda j: (0, j)),      # bias row
        ],
        out_specs=pl.BlockSpec((mp, tn), lambda j: (0, j)),
        compiler_params=pltpu.CompilerParams(
            dimension_semantics=("parallel",),
            vmem_limit_bytes=vmem_limit),
    )(x2d, wm, bias)


# ----------------------------------------------------------------------------
# Conv / pool / grid_sample building blocks (NHWC, carried 128-padded Cout)
# ----------------------------------------------------------------------------
def conv2d(x, w, meta, relu=True, out_dtype=jnp.bfloat16, force_fused=None):
    """NHWC conv (stride 1, zero pad) as a fused-tap Pallas GEMM."""
    fused = _USE_FUSED[0] if force_fused is None else force_fused
    N, H, W, C = x.shape
    kh, kw, ph, pw = meta['kh'], meta['kw'], meta['ph'], meta['pw']
    assert C == meta['cin'], (C, meta)
    n_car = w['wm'].shape[1]
    x = x.astype(jnp.bfloat16)
    Hp, Wp = H + 2 * ph, W + 2 * pw
    Ho, Wo = Hp - kh + 1, Wp - kw + 1

    if kh == 1 and kw == 1:                       # 1x1: plain GEMM, no im2col
        R = N * H * W
        Mp = _round_up(R, 8)
        x2d = x.reshape(R, C)
        if Mp != R:
            x2d = jnp.pad(x2d, ((0, Mp - R), (0, 0)))
        out = _conv_gemm(x2d, w['wm'], w['b'], taps=(0,), mp=Mp,
                         relu=relu, out_dtype=out_dtype)
        return out[:R].reshape(N, H, W, n_car)

    xp = jnp.pad(x, ((0, 0), (ph, ph), (pw, pw), (0, 0))) if (ph or pw) else x

    if fused:
        # Compute on the padded grid; valid outputs at [:Ho, :Wo], garbage
        # rows (image borders / batch wrap) are cropped afterwards.
        R = N * Hp * Wp
        Mp = _round_up(R, 8)
        taps = tuple(dy * Wp + dx for dy in range(kh) for dx in range(kw))
        Rx = Mp + taps[-1]
        x2d = xp.reshape(R, C)
        if Rx != R:
            x2d = jnp.pad(x2d, ((0, Rx - R), (0, 0)))
        out = _conv_gemm(x2d, w['wm'], w['b'], taps=taps, mp=Mp,
                         relu=relu, out_dtype=out_dtype)
        return out[:R].reshape(N, Hp, Wp, n_car)[:, :Ho, :Wo, :]

    # Fallback: XLA-level im2col patches + single-tap GEMM (same kernel).
    cols = [xp[:, dy:dy + Ho, dx:dx + Wo, :]
            for dy in range(kh) for dx in range(kw)]
    patches = jnp.concatenate(cols, axis=-1).reshape(N * Ho * Wo, kh * kw * C)
    R = N * Ho * Wo
    Mp = _round_up(R, 8)
    if Mp != R:
        patches = jnp.pad(patches, ((0, Mp - R), (0, 0)))
    out = _conv_gemm(patches, w['wm'], w['b'], taps=(0,), mp=Mp,
                     relu=relu, out_dtype=out_dtype)
    return out[:R].reshape(N, Ho, Wo, n_car)


def maxpool2(x):
    # TODO(synk): fold the pool into the adjacent conv kernel; kept in XLA.
    N, H, W, C = x.shape
    return x.reshape(N, H // 2, 2, W // 2, 2, C).max(axis=(2, 4))


def grid_sample_bilinear(x, grid):
    """F.grid_sample(x, grid, 'bilinear', padding_mode='zeros', align_corners=False)."""
    # TODO(synk): data-dependent gather stays in XLA; no clean static-tile Pallas form.
    N, H, W, C = x.shape
    gx, gy = grid[..., 0], grid[..., 1]
    ix = ((gx + 1.0) * W - 1.0) * 0.5
    iy = ((gy + 1.0) * H - 1.0) * 0.5
    ix0 = jnp.floor(ix); iy0 = jnp.floor(iy)
    ix1 = ix0 + 1.0;     iy1 = iy0 + 1.0
    wx1 = ix - ix0; wx0 = 1.0 - wx1
    wy1 = iy - iy0; wy0 = 1.0 - wy1
    xf = x.reshape(N, H * W, C)                       # gather stays in bf16

    def gather(iyc, ixc):
        valid = (ixc >= 0) & (ixc <= W - 1) & (iyc >= 0) & (iyc <= H - 1)
        ii = (jnp.clip(iyc, 0, H - 1).astype(jnp.int32) * W +
              jnp.clip(ixc, 0, W - 1).astype(jnp.int32))
        g = jax.vmap(lambda xb, ib: xb[ib, :])(xf, ii.reshape(N, -1))
        return g.reshape(N, iyc.shape[1], iyc.shape[2], C), valid

    v00, m00 = gather(iy0, ix0); v01, m01 = gather(iy0, ix1)
    v10, m10 = gather(iy1, ix0); v11, m11 = gather(iy1, ix1)
    w00 = (wy0 * wx0) * m00; w01 = (wy0 * wx1) * m01   # f32 blend weights
    w10 = (wy1 * wx0) * m10; w11 = (wy1 * wx1) * m11
    out = (v00 * w00[..., None] + v01 * w01[..., None] +
           v10 * w10[..., None] + v11 * w11[..., None])
    return out.astype(x.dtype)


# ----------------------------------------------------------------------------
# Geometry helpers (init-time, numpy) -- mirror the original utils
# ----------------------------------------------------------------------------
def homography_crop_resize(org_img_size, crop_y, resize_img_size):
    ratio_x = resize_img_size[1] / org_img_size[1]
    ratio_y = resize_img_size[0] / (org_img_size[0] - crop_y)
    return np.array([[ratio_x, 0, 0],
                     [0, ratio_y, -ratio_y * crop_y],
                     [0, 0, 1]], np.float64)


def get_perspective_transform(src, dst):
    A, bb = [], []
    for (sx, sy), (dx, dy) in zip(src, dst):
        A.append([sx, sy, 1, 0, 0, 0, -dx * sx, -dx * sy]); bb.append(dx)
        A.append([0, 0, 0, sx, sy, 1, -dy * sx, -dy * sy]); bb.append(dy)
    h = np.linalg.solve(np.array(A, np.float64), np.array(bb, np.float64))
    return np.concatenate([h, [1.0]]).reshape(3, 3)


def homography_ipmnorm2g(top_view_region):
    src = np.float64([[0, 0], [1, 0], [0, 1], [1, 1]])
    return get_perspective_transform(src, np.float64(top_view_region))


def make_base_grid(N, H, W):
    lw = np.linspace(0.0, 1.0 - 1.0 / W, W)
    lh = np.linspace(0.0, 1.0 - 1.0 / H, H)
    g = np.zeros((N, H, W, 3), np.float32)
    g[:, :, :, 0] = lw[None, None, :]
    g[:, :, :, 1] = lh[None, :, None]
    g[:, :, :, 2] = 1.0
    return jnp.asarray(g)


def project_grid(base_grid, M_inv):
    # ProjectiveGridGenerator.forward
    N, H, W, _ = base_grid.shape
    pts = base_grid.reshape(N, H * W, 3)
    g = jnp.einsum('npk,nqk->npq', pts, M_inv)     # bmm(pts, M^T)
    g = g[:, :, 0:2] / g[:, :, 2:3]
    return (g.reshape(N, H, W, 2) - 0.5) * 2.0


# ----------------------------------------------------------------------------
# Parameters: pre-packed bf16 GEMM weights, carried 128-padded channels
# ----------------------------------------------------------------------------
def _make_conv(key, cin_true, cin_carried, cout, kh, kw, ph, pw):
    w4 = jax.random.normal(key, (cout, cin_true, kh, kw), jnp.float32) * 0.02
    n_car = _round_up(cout, 128)
    wt = jnp.transpose(w4, (2, 3, 1, 0))                    # (kh, kw, cin, cout)
    wt = jnp.pad(wt, ((0, 0), (0, 0),
                      (0, cin_carried - cin_true),          # zero rows: carried pad cin
                      (0, n_car - cout)))                    # zero cols: carried pad cout
    wm = wt.reshape(kh * kw * cin_carried, n_car).astype(jnp.bfloat16)
    b = jnp.zeros((1, n_car), jnp.float32)                   # torch init: zero bias
    meta = dict(kh=kh, kw=kw, ph=ph, pw=pw, cin=cin_carried, cout=cout, ncar=n_car)
    return dict(wm=wm, b=b), meta


def init_net(key, num_lane_type, anchor_dim):
    keys = iter(jax.random.split(key, 64))
    params, arch = {}, {}

    def add(name, specs):
        ws, ms = [], []
        for (ci, cc, co, kh, kw, ph, pw) in specs:
            w, m = _make_conv(next(keys), ci, cc, co, kh, kw, ph, pw)
            ws.append(w); ms.append(m)
        params[name] = ws
        arch[name] = ms

    # VggEncoder (vgg16, no BN); (cin_true, cin_carried, cout, kh, kw, ph, pw)
    add('vgg1', [(3, 8, 64, 3, 3, 1, 1), (64, 128, 64, 3, 3, 1, 1),
                 (64, 128, 128, 3, 3, 1, 1), (128, 128, 128, 3, 3, 1, 1)])
    add('vgg2', [(128, 128, 256, 3, 3, 1, 1), (256, 256, 256, 3, 3, 1, 1),
                 (256, 256, 256, 3, 3, 1, 1)])
    add('vgg3', [(256, 256, 512, 3, 3, 1, 1), (512, 512, 512, 3, 3, 1, 1),
                 (512, 512, 512, 3, 3, 1, 1)])
    add('vgg4', [(512, 512, 512, 3, 3, 1, 1)] * 3)
    # 1x1 dim reductions
    add('dim_rt1', [(256, 256, 128, 1, 1, 0, 0)])
    add('dim_rt2', [(512, 512, 256, 1, 1, 0, 0)])
    add('dim_rt3', [(512, 512, 256, 1, 1, 0, 0)])
    # TopViewPathway
    add('top1', [(128, 128, 128, 3, 3, 1, 1)] * 3)
    add('top2', [(256, 256, 256, 3, 3, 1, 1)] * 3)
    add('top3', [(512, 512, 256, 3, 3, 1, 1), (256, 256, 256, 3, 3, 1, 1),
                 (256, 256, 256, 3, 3, 1, 1)])
    # LanePredictionHead
    add('lane_feat', [(512, 512, 64, 3, 3, 0, 1), (64, 128, 64, 3, 3, 0, 1),
                      (64, 128, 64, 3, 3, 0, 1),
                      (64, 128, 64, 5, 5, 0, 2), (64, 128, 64, 5, 5, 0, 2),
                      (64, 128, 64, 5, 5, 0, 2), (64, 128, 64, 5, 5, 0, 2)])
    add('lane_dim_rt', [(256, 512, 128, 5, 1, 2, 0),
                        (128, 128, num_lane_type * anchor_dim, 5, 1, 2, 0)])
    return params, arch


# ----------------------------------------------------------------------------
# Net.forward (pred_cam=False branch), NHWC internal layout
# ----------------------------------------------------------------------------
def net_forward(params, x_nchw, M_inv, base_grids, cam_height, cam_pitch,
                *, arch, num_lane_type, anchor_dim):
    def conv_seq(h, name):
        for w, m in zip(params[name], arch[name]):
            h = conv2d(h, w, m)
        return h

    # One NCHW->NHWC transpose + channel pad at the very top; bf16 downstream.
    h = jnp.transpose(x_nchw, (0, 2, 3, 1)).astype(jnp.bfloat16)
    h = jnp.pad(h, ((0, 0), (0, 0), (0, 0),
                    (0, arch['vgg1'][0]['cin'] - h.shape[-1])))

    # ---- VggEncoder ----
    for idx, (w, m) in enumerate(zip(params['vgg1'], arch['vgg1'])):
        h = conv2d(h, w, m)
        if idx == 1:
            h = maxpool2(h)
    x1 = h
    x2 = conv_seq(maxpool2(x1), 'vgg2')
    x3 = conv_seq(maxpool2(x2), 'vgg3')
    x4 = conv_seq(maxpool2(x3), 'vgg4')

    # ---- projective grids + grid_sample + 1x1 dim reductions ----
    grid1 = project_grid(base_grids[0], M_inv)
    grid2 = project_grid(base_grids[1], M_inv)
    grid3 = project_grid(base_grids[2], M_inv)
    grid4 = project_grid(base_grids[3], M_inv)
    x1_proj = grid_sample_bilinear(x1, grid1)
    x2_proj = conv_seq(grid_sample_bilinear(x2, grid2), 'dim_rt1')
    x3_proj = conv_seq(grid_sample_bilinear(x3, grid3), 'dim_rt2')
    x4_proj = conv_seq(grid_sample_bilinear(x4, grid4), 'dim_rt3')

    # ---- TopViewPathway ----
    h = conv_seq(maxpool2(x1_proj), 'top1')
    h = jnp.concatenate([h, x2_proj], axis=-1)
    h = conv_seq(maxpool2(h), 'top2')
    h = jnp.concatenate([h, x3_proj], axis=-1)
    h = conv_seq(maxpool2(h), 'top3')
    h = jnp.concatenate([h, x4_proj], axis=-1)

    # ---- LanePredictionHead ----
    h = conv_seq(h, 'lane_feat')
    N, H, W, C = h.shape
    # torch: (N,C,H,W) -> (N, C*H, W, 1); NHWC equivalent with (c, h) channel order
    h = h.transpose(0, 2, 3, 1).reshape(N, W, 1, C * H)
    h = conv2d(h, params['lane_dim_rt'][0], arch['lane_dim_rt'][0])
    h = conv2d(h, params['lane_dim_rt'][1], arch['lane_dim_rt'][1],
               relu=False, out_dtype=jnp.float32)
    out = h[:, :, 0, :num_lane_type * anchor_dim]      # (N, W, lane*anchor)
    for i in range(num_lane_type):
        col = (i + 1) * anchor_dim - 1
        out = out.at[:, :, col].set(jax.nn.sigmoid(out[:, :, col]))
    return out, cam_height, cam_pitch


# ----------------------------------------------------------------------------
# Runtime probe + reference check
# ----------------------------------------------------------------------------
def _probe_fused_taps():
    """Compile/run a tiny fused-tap conv; fall back to XLA im2col if Mosaic
    rejects statically shifted sublane slices on this toolchain."""
    try:
        w, meta = _make_conv(jax.random.PRNGKey(1), 5, 8, 8, 3, 3, 1, 1)
        x = jnp.ones((1, 8, 8, 8), jnp.bfloat16)
        y = conv2d(x, w, meta, relu=True, out_dtype=jnp.float32, force_fused=True)
        jax.block_until_ready(y)
        return bool(jnp.all(jnp.isfinite(y)))
    except Exception:
        return False


def _check_conv_vs_xla():
    """Tolerance-asserted reference for the packed-weight fused-tap conv."""
    k1, k2 = jax.random.split(jax.random.PRNGKey(2))
    cin_t, cin_c, cout = 5, 8, 12
    w, meta = _make_conv(k1, cin_t, cin_c, cout, 3, 3, 1, 1)
    x = jax.random.normal(k2, (2, 9, 7, cin_c), jnp.float32)
    x = x.at[..., cin_t:].set(0.0).astype(jnp.bfloat16)
    y = conv2d(x, w, meta, relu=True, out_dtype=jnp.float32)[..., :cout]
    w_hwio = w['wm'].astype(jnp.float32).reshape(3, 3, cin_c, -1)[:, :, :cin_t, :cout]
    ref = lax.conv_general_dilated(
        x[..., :cin_t].astype(jnp.float32), w_hwio, (1, 1), ((1, 1), (1, 1)),
        dimension_numbers=('NHWC', 'HWIO', 'NHWC'),
        precision=lax.Precision.HIGHEST)
    ref = jnp.maximum(ref, 0.0)
    err = float(jnp.max(jnp.abs(y - ref)))
    assert err < 3e-2, f"conv2d mismatch vs XLA reference: max|err|={err}"


# ----------------------------------------------------------------------------
if __name__ == "__main__":
    # args (small but shape-consistent with the module)
    batch_size = 2
    org_h, org_w = 64, 64
    crop_y = 0
    resize_h, resize_w = 32, 32
    ipm_h, ipm_w = 208, 16            # ipm_h/8 = 26 -> lane head collapses H to 4
    cam_height_v = 1.5
    pitch_deg = 3.0
    num_y_steps = 4
    num_lane_type = 1                 # no_centerline
    anchor_dim = num_y_steps + 1      # no_3d
    K_cam = np.array([[100.0, 0.0, org_w / 2.0],
                      [0.0, 100.0, org_h / 2.0],
                      [0.0, 0.0, 1.0]], np.float64)
    top_view_region = np.array([[-10, 100], [10, 100], [-10, 3], [10, 3]], np.float64)

    # M_inv as built in Net.__init__
    cam_pitch_v = np.pi / 180.0 * pitch_deg
    S_im_inv = np.array([[1.0 / resize_w, 0, 0], [0, 1.0 / resize_h, 0], [0, 0, 1]],
                        np.float64)
    H_c = homography_crop_resize(np.array([org_h, org_w]), crop_y,
                                 np.array([resize_h, resize_w]))
    H_g2cam = np.array([[1, 0, 0],
                        [0, np.sin(-cam_pitch_v), cam_height_v],
                        [0, np.cos(-cam_pitch_v), 0]], np.float64)
    H_ipm2g = homography_ipmnorm2g(top_view_region)
    M = S_im_inv @ H_c @ K_cam @ H_g2cam @ H_ipm2g
    M = M / M[2, 2]
    M_inv = jnp.asarray(np.broadcast_to(M[None], (batch_size, 3, 3)).astype(np.float32))

    cam_height = jnp.full((batch_size, 1), cam_height_v, jnp.float32)
    cam_pitch = jnp.full((batch_size, 1), cam_pitch_v, jnp.float32)

    base_grids = [
        make_base_grid(batch_size, ipm_h, ipm_w),
        make_base_grid(batch_size, ipm_h // 2, ipm_w // 2),
        make_base_grid(batch_size, ipm_h // 4, ipm_w // 4),
        make_base_grid(batch_size, ipm_h // 8, ipm_w // 8),
    ]

    key = jax.random.PRNGKey(0)
    pkey, xkey = jax.random.split(key)
    params, arch = init_net(pkey, num_lane_type, anchor_dim)
    x = jax.random.normal(xkey, (batch_size, 3, resize_h, resize_w), jnp.float32)

    # Probe the fused-tap lowering, then sanity-check conv semantics.
    _USE_FUSED[0] = _probe_fused_taps()
    _check_conv_vs_xla()

    fwd = jax.jit(functools.partial(net_forward, arch=arch,
                                    num_lane_type=num_lane_type,
                                    anchor_dim=anchor_dim))
    out, ch, cp = fwd(params, x, M_inv, base_grids, cam_height, cam_pitch)
    jax.block_until_ready(out)

    assert out.shape == (batch_size, ipm_w // 8, num_lane_type * anchor_dim), out.shape
    assert ch.shape == (batch_size, 1) and cp.shape == (batch_size, 1)
    assert bool(jnp.all(jnp.isfinite(out)))
    print("KERNEL_OK")
</pallas_src>

<mosaic_0001>
module attributes {stable_mosaic.version = 11 : i64} {
  func.func @_conv_kernel(%arg0: i32, %arg1: memref<126x8xbf16, #tpu.memory_space<vmem>>, %arg2: memref<72x128xbf16, #tpu.memory_space<vmem>>, %arg3: memref<1x128xf32, #tpu.memory_space<vmem>>, %arg4: memref<104x128xf32, #tpu.memory_space<vmem>>) attributes {dimension_semantics = [#tpu.dimension_semantics<parallel>], iteration_bounds = array<i64: 1>, scalar_prefetch = 0 : i64, scratch_operands = 0 : i64, tpu.core_type = #tpu.core_type<tc>, window_params = [{pipeline_mode = #tpu.pipeline_mode<synchronous>, transform_indices = @transform_0, window_bounds = array<i64: 126, 8>}, {transform_indices = @transform_1, window_bounds = array<i64: 72, 128>}, {transform_indices = @transform_2, window_bounds = array<i64: 1, 128>}, {transform_indices = @transform_3, window_bounds = array<i64: 104, 128>}]} {
    %c0 = arith.constant 0 : index
    %c0_0 = arith.constant 0 : index
    %0 = vector.load %arg1[%c0, %c0_0] : memref<126x8xbf16, #tpu.memory_space<vmem>>, vector<104x8xbf16>
    %c0_1 = arith.constant 0 : index
    %c0_2 = arith.constant 0 : index
    %1 = vector.load %arg2[%c0_1, %c0_2] : memref<72x128xbf16, #tpu.memory_space<vmem>>, vector<8x128xbf16>
    %cst = arith.constant dense<0.000000e+00> : vector<104x128xf32>
    %2 = tpu.matmul %0, %1, %cst {dimension_numbers = #tpu.dot_dimension_numbers<[1], [0], [0], [1], [0, 0, 1, 1], [], []>} : vector<104x8xbf16>, vector<8x128xbf16>, vector<104x128xf32> -> vector<104x128xf32>
    %c1 = arith.constant 1 : index
    %c0_3 = arith.constant 0 : index
    %3 = vector.load %arg1[%c1, %c0_3] : memref<126x8xbf16, #tpu.memory_space<vmem>>, vector<104x8xbf16>
    %c8 = arith.constant 8 : index
    %c0_4 = arith.constant 0 : index
    %4 = vector.load %arg2[%c8, %c0_4] : memref<72x128xbf16, #tpu.memory_space<vmem>>, vector<8x128xbf16>
    %cst_5 = arith.constant dense<0.000000e+00> : vector<104x128xf32>
    %5 = tpu.matmul %3, %4, %cst_5 {dimension_numbers = #tpu.dot_dimension_numbers<[1], [0], [0], [1], [0, 0, 1, 1], [], []>} : vector<104x8xbf16>, vector<8x128xbf16>, vector<104x128xf32> -> vector<104x128xf32>
    %6 = arith.addf %2, %5 : vector<104x128xf32>
    %c2 = arith.constant 2 : index
    %c0_6 = arith.constant 0 : index
    %7 = vector.load %arg1[%c2, %c0_6] : memref<126x8xbf16, #tpu.memory_space<vmem>>, vector<104x8xbf16>
    %c16 = arith.constant 16 : index
    %c0_7 = arith.constant 0 : index
    %8 = vector.load %arg2[%c16, %c0_7] : memref<72x128xbf16, #tpu.memory_space<vmem>>, vector<8x128xbf16>
    %cst_8 = arith.constant dense<0.000000e+00> : vector<104x128xf32>
    %9 = tpu.matmul %7, %8, %cst_8 {dimension_numbers = #tpu.dot_dimension_numbers<[1], [0], [0], [1], [0, 0, 1, 1], [], []>} : vector<104x8xbf16>, vector<8x128xbf16>, vector<104x128xf32> -> vector<104x128xf32>
    %10 = arith.addf %6, %9 : vector<104x128xf32>
    %c10 = arith.constant 10 : index
    %c0_9 = arith.constant 0 : index
    %11 = vector.load %arg1[%c10, %c0_9] : memref<126x8xbf16, #tpu.memory_space<vmem>>, vector<104x8xbf16>
    %c24 = arith.constant 24 : index
    %c0_10 = arith.constant 0 : index
    %12 = vector.load %arg2[%c24, %c0_10] : memref<72x128xbf16, #tpu.memory_space<vmem>>, vector<8x128xbf16>
    %cst_11 = arith.constant dense<0.000000e+00> : vector<104x128xf32>
    %13 = tpu.matmul %11, %12, %cst_11 {dimension_numbers = #tpu.dot_dimension_numbers<[1], [0], [0], [1], [0, 0, 1, 1], [], []>} : vector<104x8xbf16>, vector<8x128xbf16>, vector<104x128xf32> -> vector<104x128xf32>
    %14 = arith.addf %10, %13 : vector<104x128xf32>
    %c11 = arith.constant 11 : index
    %c0_12 = arith.constant 0 : index
    %15 = vector.load %arg1[%c11, %c0_12] : memref<126x8xbf16, #tpu.memory_space<vmem>>, vector<104x8xbf16>
    %c32 = arith.constant 32 : index
    %c0_13 = arith.constant 0 : index
    %16 = vector.load %arg2[%c32, %c0_13] : memref<72x128xbf16, #tpu.memory_space<vmem>>, vector<8x128xbf16>
    %cst_14 = arith.constant dense<0.000000e+00> : vector<104x128xf32>
    %17 = tpu.matmul %15, %16, %cst_14 {dimension_numbers = #tpu.dot_dimension_numbers<[1], [0], [0], [1], [0, 0, 1, 1], [], []>} : vector<104x8xbf16>, vector<8x128xbf16>, vector<104x128xf32> -> vector<104x128xf32>
    %18 = arith.addf %14, %17 : vector<104x128xf32>
    %c12 = arith.constant 12 : index
    %c0_15 = arith.constant 0 : index
    %19 = vector.load %arg1[%c12, %c0_15] : memref<126x8xbf16, #tpu.memory_space<vmem>>, vector<104x8xbf16>
    %c40 = arith.constant 40 : index
    %c0_16 = arith.constant 0 : index
    %20 = vector.load %arg2[%c40, %c0_16] : memref<72x128xbf16, #tpu.memory_space<vmem>>, vector<8x128xbf16>
    %cst_17 = arith.constant dense<0.000000e+00> : vector<104x128xf32>
    %21 = tpu.matmul %19, %20, %cst_17 {dimension_numbers = #tpu.dot_dimension_numbers<[1], [0], [0], [1], [0, 0, 1, 1], [], []>} : vector<104x8xbf16>, vector<8x128xbf16>, vector<104x128xf32> -> vector<104x128xf32>
    %22 = arith.addf %18, %21 : vector<104x128xf32>
    %c20 = arith.constant 20 : index
    %c0_18 = arith.constant 0 : index
    %23 = vector.load %arg1[%c20, %c0_18] : memref<126x8xbf16, #tpu.memory_space<vmem>>, vector<104x8xbf16>
    %c48 = arith.constant 48 : index
    %c0_19 = arith.constant 0 : index
    %24 = vector.load %arg2[%c48, %c0_19] : memref<72x128xbf16, #tpu.memory_space<vmem>>, vector<8x128xbf16>
    %cst_20 = arith.constant dense<0.000000e+00> : vector<104x128xf32>
    %25 = tpu.matmul %23, %24, %cst_20 {dimension_numbers = #tpu.dot_dimension_numbers<[1], [0], [0], [1], [0, 0, 1, 1], [], []>} : vector<104x8xbf16>, vector<8x128xbf16>, vector<104x128xf32> -> vector<104x128xf32>
    %26 = arith.addf %22, %25 : vector<104x128xf32>
    %c21 = arith.constant 21 : index
    %c0_21 = arith.constant 0 : index
    %27 = vector.load %arg1[%c21, %c0_21] : memref<126x8xbf16, #tpu.memory_space<vmem>>, vector<104x8xbf16>
    %c56 = arith.constant 56 : index
    %c0_22 = arith.constant 0 : index
    %28 = vector.load %arg2[%c56, %c0_22] : memref<72x128xbf16, #tpu.memory_space<vmem>>, vector<8x128xbf16>
    %cst_23 = arith.constant dense<0.000000e+00> : vector<104x128xf32>
    %29 = tpu.matmul %27, %28, %cst_23 {dimension_numbers = #tpu.dot_dimension_numbers<[1], [0], [0], [1], [0, 0, 1, 1], [], []>} : vector<104x8xbf16>, vector<8x128xbf16>, vector<104x128xf32> -> vector<104x128xf32>
    %30 = arith.addf %26, %29 : vector<104x128xf32>
    %c22 = arith.constant 22 : index
    %c0_24 = arith.constant 0 : index
    %31 = vector.load %arg1[%c22, %c0_24] : memref<126x8xbf16, #tpu.memory_space<vmem>>, vector<104x8xbf16>
    %c64 = arith.constant 64 : index
    %c0_25 = arith.constant 0 : index
    %32 = vector.load %arg2[%c64, %c0_25] : memref<72x128xbf16, #tpu.memory_space<vmem>>, vector<8x128xbf16>
    %cst_26 = arith.constant dense<0.000000e+00> : vector<104x128xf32>
    %33 = tpu.matmul %31, %32, %cst_26 {dimension_numbers = #tpu.dot_dimension_numbers<[1], [0], [0], [1], [0, 0, 1, 1], [], []>} : vector<104x8xbf16>, vector<8x128xbf16>, vector<104x128xf32> -> vector<104x128xf32>
    %34 = arith.addf %30, %33 : vector<104x128xf32>
    %c0_27 = arith.constant 0 : index
    %c0_28 = arith.constant 0 : index
    %35 = vector.load %arg3[%c0_27, %c0_28] : memref<1x128xf32, #tpu.memory_space<vmem>>, vector<1x128xf32>
    %36 = vector.broadcast %35 : vector<1x128xf32> to vector<104x128xf32>
    %37 = arith.addf %34, %36 : vector<104x128xf32>
    %cst_29 = arith.constant 0.000000e+00 : f32
    %38 = vector.broadcast %cst_29 : f32 to vector<104x128xf32>
    %39 = arith.maximumf %37, %38 : vector<104x128xf32>
    %c0_30 = arith.constant 0 : index
    %c0_31 = arith.constant 0 : index
    %40 = vector.load %arg4[%c0_30, %c0_31] : memref<104x128xf32, #tpu.memory_space<vmem>>, vector<104x128xf32>
    tpu.vector_store %arg4[%c0_30, %c0_31], %39 {strides = array<i32>} : memref<104x128xf32, #tpu.memory_space<vmem>>, vector<104x128xf32>,
    return
  }
  func.func @transform_0(%arg0: i32) -> (i32, i32) {
    %c0_i32 = arith.constant 0 : i32
    %c0_i32_0 = arith.constant 0 : i32
    %c0_i32_1 = arith.constant 0 : i32
    return %c0_i32, %c0_i32_0 : i32, i32
  }
  func.func @transform_1(%arg0: i32) -> (i32, i32) {
    %c0_i32 = arith.constant 0 : i32
    %c0_i32_0 = arith.constant 0 : i32
    return %c0_i32, %arg0 : i32, i32
  }
  func.func @transform_2(%arg0: i32) -> (i32, i32) {
    %c0_i32 = arith.constant 0 : i32
    %c0_i32_0 = arith.constant 0 : i32
    return %c0_i32, %arg0 : i32, i32
  }
  func.func @transform_3(%arg0: i32) -> (i32, i32) {
    %c0_i32 = arith.constant 0 : i32
    %c0_i32_0 = arith.constant 0 : i32
    return %c0_i32, %arg0 : i32, i32
  }
}

module attributes {stable_mosaic.version = 11 : i64} {
  func.func @_conv_kernel(%arg0: i32, %arg1: memref<128x72xbf16, #tpu.memory_space<vmem>>, %arg2: memref<72x128xbf16, #tpu.memory_space<vmem>>, %arg3: memref<1x128xf32, #tpu.memory_space<vmem>>, %arg4: memref<128x128xf32, #tpu.memory_space<vmem>>) attributes {dimension_semantics = [#tpu.dimension_semantics<parallel>], iteration_bounds = array<i64: 1>, scalar_prefetch = 0 : i64, scratch_operands = 0 : i64, tpu.core_type = #tpu.core_type<tc>, window_params = [{pipeline_mode = #tpu.pipeline_mode<synchronous>, transform_indices = @transform_0, window_bounds = array<i64: 128, 72>}, {transform_indices = @transform_1, window_bounds = array<i64: 72, 128>}, {transform_indices = @transform_2, window_bounds = array<i64: 1, 128>}, {transform_indices = @transform_3, window_bounds = array<i64: 128, 128>}]} {
    %c0 = arith.constant 0 : index
    %c0_0 = arith.constant 0 : index
    %0 = vector.load %arg1[%c0, %c0_0] : memref<128x72xbf16, #tpu.memory_space<vmem>>, vector<128x72xbf16>
    %c0_1 = arith.constant 0 : index
    %c0_2 = arith.constant 0 : index
    %1 = vector.load %arg2[%c0_1, %c0_2] : memref<72x128xbf16, #tpu.memory_space<vmem>>, vector<72x128xbf16>
    %cst = arith.constant dense<0.000000e+00> : vector<128x128xf32>
    %2 = tpu.matmul %0, %1, %cst {dimension_numbers = #tpu.dot_dimension_numbers<[1], [0], [0], [1], [0, 0, 1, 1], [], []>} : vector<128x72xbf16>, vector<72x128xbf16>, vector<128x128xf32> -> vector<128x128xf32>
    %c0_3 = arith.constant 0 : index
    %c0_4 = arith.constant 0 : index
    %3 = vector.load %arg3[%c0_3, %c0_4] : memref<1x128xf32, #tpu.memory_space<vmem>>, vector<1x128xf32>
    %4 = vector.broadcast %3 : vector<1x128xf32> to vector<128x128xf32>
    %5 = arith.addf %2, %4 : vector<128x128xf32>
    %cst_5 = arith.constant 0.000000e+00 : f32
    %6 = vector.broadcast %cst_5 : f32 to vector<128x128xf32>
    %7 = arith.maximumf %5, %6 : vector<128x128xf32>
    %c0_6 = arith.constant 0 : index
    %c0_7 = arith.constant 0 : index
    %8 = vector.load %arg4[%c0_6, %c0_7] : memref<128x128xf32, #tpu.memory_space<vmem>>, vector<128x128xf32>
    tpu.vector_store %arg4[%c0_6, %c0_7], %7 {strides = array<i32>} : memref<128x128xf32, #tpu.memory_space<vmem>>, vector<128x128xf32>,
    return
  }
  func.func @transform_0(%arg0: i32) -> (i32, i32) {
    %c0_i32 = arith.constant 0 : i32
    %c0_i32_0 = arith.constant 0 : i32
    %c0_i32_1 = arith.constant 0 : i32
    return %c0_i32, %c0_i32_0 : i32, i32
  }
  func.func @transform_1(%arg0: i32) -> (i32, i32) {
    %c0_i32 = arith.constant 0 : i32
    %c0_i32_0 = arith.constant 0 : i32
    return %c0_i32, %arg0 : i32, i32
  }
  func.func @transform_2(%arg0: i32) -> (i32, i32) {
    %c0_i32 = arith.constant 0 : i32
    %c0_i32_0 = arith.constant 0 : i32
    return %c0_i32, %arg0 : i32, i32
  }
  func.func @transform_3(%arg0: i32) -> (i32, i32) {
    %c0_i32 = arith.constant 0 : i32
    %c0_i32_0 = arith.constant 0 : i32
    return %c0_i32, %arg0 : i32, i32
  }
}

</mosaic_0001>

<bundles_post_ra>
// kernel: tpu_custom_call.1
= control target key start
LH: loop header
LB: loop body
LE: loop exit
PB: predicated region body
PF: predicated region fallthrough
CT: control target
= control target key end

     0   :  { %vm145_vm0 = vcmask 1043456   ;;  %v2091_v2 = vmov 0.0   ;;  %vm67_vm1 = vsmask.f32 7424  ;;  %vm2092_vm2 = vmmov 0   ;;  %s2793_s0 = inlined_call_operand.vmem [shape: bf16[126,8], index: 0, kind: input, shape index: {}]   ;;  %s2794_s1 = inlined_call_operand.vmem [shape: bf16[72,128], index: 1, kind: input, shape index: {}]   ;;  %s2795_s2 = inlined_call_operand.vmem [shape: f32[1,128], index: 2, kind: input, shape index: {}]   ;;  %s2796_s3 = inlined_call_operand.hbm [shape: f32[104,128], index: 3, kind: output, shape index: {}]  }
   0x1   :  { %v31_v0 = vld [vmem:[%s2794_s1 + $0x4] sm:$0xf]  ;;  %v2122_v1 = vld [vmem:[%s2793_s0 + $0x8] sm:$0xff]   ;;  %1763 = vmatprep.subr.bf16.mxu0 %v2091_v2  ;;  %2033 = vmatprep.subr.bf16.mxu1 %v2091_v2  ;;  %v16_v4 = vld [vmem:[%s2793_s0] sm:$0xf]  ;;  %vm123_vm3 = vcmask 64512  }
   0x2   :  { %v147_v3 = vsel %vm145_vm0, %v31_v0, 0  ;;  %v2133_v5 = vld [vmem:[%s2793_s0 + $0x4] sm:$0xf]  ;;  %1765 = vmatprep.mubr.msk.bf16.mxu0 %vm2092_vm2, %v2091_v2  ;;  %1781 = vmatprep.mubr.msk.bf16.mxu1 %vm2092_vm2, %v2091_v2  ;;  %v76_v7 = vshll.u32 %v2122_v1, 16  ;;  %v2155_v11 = vld [vmem:[%s2793_s0 + $0x28] sm:$0xff]   ;;  %v2170_v21 = vld [vmem:[%s2793_s0 + $0x10] sm:$0xff]  }
   0x3   :  { %1764 = vmatpush3.bf16.msra.mxu0 %v147_v3  ;;  %2034 = vmatpush3.bf16.msra.mxu1 %v147_v3  ;;  %v2136_v6 = vcombine.low %v16_v4, %v2133_v5  ;;  %v2146_v8 = vld [vmem:[%s2793_s0 + $0x20] sm:$0xff]   ;;  %v345_v14 = vld [vmem:[%s2794_s1 + $0x8] sm:$0xf]  ;;  %v108_v19 = vshll.u32 %v2155_v11, 16  ;;  %v80_v23 = vshrl.u32 %v2122_v1, 16  ;;  %v112_v26 = vshrl.u32 %v2155_v11, 16 }
   0x4   :  { %1823 = vmatprep.subr.bf16.mxu0 %v2091_v2  ;;  %1793 = vmatprep.subr.bf16.mxu1 %v2091_v2  ;;  %v100_v12 = vshll.u32 %v2146_v8, 16  ;;  %v104_v13 = vshrl.u32 %v2146_v8, 16  ;;  %v78_v16 = vrot.slane %v76_v7, 1  ;;  %v29_v17 = vld [vmem:[%s2794_s1] sm:$0xf]  ;;  %v385_v20 = vsel %vm145_vm0, %v345_v14, 0 }
   0x5   :  { %v69_v9 = vshrl.u32 %v2136_v6, 16  ;;  %v71_v10 = vshll.u32 %v2136_v6, 16  ;;  %v2176_v24 = vld [vmem:[%s2793_s0 + $0x30] sm:$0xf]  ;;  %v30_v25 = vld [vmem:[%s2793_s0 + $0x34] sm:$0x1] }
   0x6   :  { %v102_v18 = vrot.slane %v100_v12, 1  ;;  %v110_v28 = vrot.slane %v108_v19, 1  ;;  %v84_v29 = vshll.u32 %v2170_v21, 16  ;;  %v2184_v30 = vcombine.low %v2176_v24, %v30_v25  ;;  %v2195_v37 = vld [vmem:[%s2793_s0 + $0x18] sm:$0xff]   ;;  %v344_v51 = vld [vmem:[%s2793_s0] sm:$0xe] }
   0x7   :  { %v73_v15 = vrot.slane %v71_v10, 1  ;;  %v254_v32 = vsel %vm145_vm0, %v29_v17, 0  ;;  %v82_v35 = vor.u32 %v80_v23, %v78_v16  ;;  %v88_v41 = vshrl.u32 %v2170_v21, 16  ;;  %v502_v52 = vld [vmem:[%s2794_s1 + $0xc] sm:$0xf] }
   0x8   :  { %v106_v27 = vor.u32 %v104_v13, %v102_v18  ;;  %v116_v34 = vshll.u32 %v2184_v30, 16  ;;  %v86_v36 = vrot.slane %v84_v29, 1  ;;  %v114_v38 = vor.u32 %v112_v26, %v110_v28 }
   0x9   :  { %v74_v22 = vor.u32 %v73_v15, %v69_v9  ;;  %v92_v42 = vshll.u32 %v2195_v37, 16  ;;  %v120_v46 = vshrl.u32 %v2184_v30, 16  ;;  %v96_v49 = vshrl.u32 %v2195_v37, 16 }
   0xa   :  { %v111_v33 = vsel %vm67_vm1, %v106_v27, %v110_v28  ;;  %v118_v39 = vrot.slane %v116_v34, 1  ;;  %v87_v40 = vsel %vm67_vm1, %v82_v35, %v86_v36  ;;  %v90_v44 = vor.u32 %v88_v41, %v86_v36 }
   0xb   :  { %v79_v31 = vsel %vm67_vm1, %v74_v22, %v78_v16  ;;  %1782 = vmatmul.mubr.msk.bf16.vlgmr.msra.gmra.mrb[0].mxu1 %vm123_vm3, %v111_v33  ;;  %v94_v45 = vrot.slane %v92_v42, 1  ;;  %v1622_v54 = vcombine.low %v344_v51, %v2133_v5  ;;  %v573_v55 = vsel %vm145_vm0, %v502_v52, 0 }
   0xc   :  { %1766 = vmatmul.mubr.msk.bf16.vlgmr.msra.gmra.mrb[0].mxu0 %vm123_vm3, %v79_v31  ;;  %1794 = vmatpush3.bf16.msra.mxu1 %v254_v32  ;;  %v119_v43 = vsel %vm67_vm1, %v114_v38, %v118_v39  ;;  %v122_v48 = vor.u32 %v120_v46, %v118_v39 }
   0xd   :  { %1824 = vmatpush3.bf16.msra.mxu0 %v385_v20  ;;  %1769 = vmatprep.mubr.msk.bf16.mxu0 %vm2092_vm2, %v2091_v2  ;;  %v95_v47 = vsel %vm67_vm1, %v90_v44, %v94_v45  ;;  %v98_v50 = vor.u32 %v96_v49, %v94_v45 }
   0xe   :  { %1785 = vmatprep.mubr.msk.bf16.mxu1 %vm2092_vm2, %v2091_v2  ;;  %1853 = vmatprep.subr.bf16.mxu1 %v2091_v2 }
   0xf   :  { %1883 = vmatprep.subr.bf16.mxu0 %v2091_v2  ;;  %v103_v53 = vsel %vm67_vm1, %v98_v50, %v102_v18 }
  0x13   :  { %1786 = vmatmul.mubr.msk.bf16.gmra.mrb[4].mxu1 %vm123_vm3, %v119_v43 }
  0x14   :  { %1770 = vmatmul.mubr.msk.bf16.gmra.mrb[4].mxu0 %vm123_vm3, %v87_v40  ;;  %1789 = vmatprep.mubr.msk.bf16.mxu1 %vm2092_vm2, %v2091_v2 }
  0x15   :  { %1773 = vmatprep.mubr.msk.bf16.mxu0 %vm2092_vm2, %v2091_v2 }
  0x1b   :  { %1790 = vmatmul.mubr.msk.bf16.gmra.mrb[8].mxu1 %vm123_vm3, %v122_v48 }
  0x1c   :  { %1774 = vmatmul.mubr.msk.bf16.gmra.mrb[8].mxu0 %vm123_vm3, %v95_v47  ;;  %1795 = vmatprep.mubr.msk.bf16.mxu1 %vm2092_vm2, %v2091_v2 }
  0x1d   :  { %1777 = vmatprep.mubr.msk.bf16.mxu0 %vm2092_vm2, %v2091_v2 }
  0x1e   :  { %8 = vsyncpa [#allocation3], 0  ;;  %v350_v56 = vrot.slane %v1622_v54, 1  ;;  %v351_v57 = vrot.slane %v2122_v1, 1  ;;  %vm349_vm4 = vcmask 1046528   ;;  %v353_v61 = vrot.slane %v2170_v21, 1 }
  0x1f   :  { %v677_v58 = vld [vmem:[%s2794_s1 + $0x10] sm:$0xf]  ;;  %v355_v63 = vrot.slane %v2195_v37, 1  ;;  %v359_v4 = vrot.slane %v2155_v11, 1  ;;  %v488_v7 = vld [vmem:[%s2793_s0 + $0x4] sm:$0xe]  ;;  %v1614_v9 = vcombine.low %v2176_v24, %v2176_v24 }
  0x20   :  { %v352_v59 = vsel %vm349_vm4, %v350_v56, %v351_v57  ;;  %v766_v60 = vsel %vm145_vm0, %v677_v58, 0  ;;  %v354_v62 = vsel %vm349_vm4, %v351_v57, %v353_v61  ;;  %v2305_v12 = vld [vmem:[%s2793_s0 + $0xc] sm:$0xff]   ;;  %v870_v19 = vld [vmem:[%s2794_s1 + $0x14] sm:$0xf]  ;;  %vm681_vm5 = vsmask.f32 6400 }
  0x21   :  { %v356_v0 = vsel %vm349_vm4, %v353_v61, %v355_v63  ;;  %v691_v15 = vshrl.u32 %v2305_v12, 16  ;;  %v694_v16 = vshll.u32 %v2305_v12, 16  ;;  %v539_v18 = vrot.slane %v2305_v12, 1  ;;  %v2323_v25 = vld [vmem:[%s2793_s0 + $0x14] sm:$0xff]   ;;  %v2345_v38 = vld [vmem:[%s2793_s0 + $0x1c] sm:$0xff]   ;;  %v2362_v47 = vld [vmem:[%s2793_s0 + $0x24] sm:$0xff]  }
  0x22   :  { %v910_v26 = vsel %vm145_vm0, %v870_v19, 0  ;;  %v700_v29 = vshrl.u32 %v2323_v25, 16  ;;  %v541_v31 = vrot.slane %v2323_v25, 1  ;;  %v1027_v32 = vld [vmem:[%s2794_s1 + $0x18] sm:$0xf]  ;;  %v709_v40 = vshrl.u32 %v2345_v38, 16 }
  0x23   :  { %1796 = vmatmul.mubr.msk.bf16.vlgmr.msra.gmra.mrb[12].mxu1 %vm123_vm3, %v2136_v6  ;;  %v361_v6 = vrot.slane %v2184_v30, 1  ;;  %v693_v22 = vrot.slane %v691_v15, 1  ;;  %v696_v23 = vrot.slane %v694_v16, 2  ;;  %v703_v30 = vshll.u32 %v2323_v25, 16  ;;  %v2378_v56 = vld [vmem:[%s2793_s0 + $0x2c] sm:$0xff]  }
  0x24   :  { %1778 = vmatmul.mubr.msk.bf16.gmra.mrb[12].mxu0 %vm123_vm3, %v103_v53  ;;  %1854 = vmatpush3.bf16.msra.mxu1 %v573_v55  ;;  %v702_v34 = vrot.slane %v700_v29, 1  ;;  %v542_v36 = vsel %vm349_vm4, %v539_v18, %v541_v31  ;;  %v712_v41 = vshll.u32 %v2345_v38, 16  ;;  %v543_v42 = vrot.slane %v2345_v38, 1  ;;  %v676_v61 = vld [vmem:[%s2793_s0 + $0x38] sm:$0x3] }
  0x25   :  { %1825 = vmatprep.mubr.msk.bf16.mxu0 %vm2092_vm2, %v2091_v2  ;;  %1799 = vmatprep.mubr.msk.bf16.mxu1 %vm2092_vm2, %v2091_v2  ;;  %v362_v10 = vsel %vm349_vm4, %v359_v4, %v361_v6  ;;  %v697_v28 = vor.u32 %v696_v23, %v693_v22  ;;  %v705_v35 = vrot.slane %v703_v30, 2  ;;  %v711_v44 = vrot.slane %v709_v40, 1  ;;  %v1013_v23 = vld [vmem:[%s2793_s0 + $0x8] sm:$0xc]  ;;  %v2483_v40 = vld [vmem:[%s2793_s0 + $0x20] sm:$0xff]  }
  0x26   :  { %1913 = vmatprep.subr.bf16.mxu1 %v2091_v2  ;;  %v714_v45 = vrot.slane %v712_v41, 2  ;;  %v544_v46 = vsel %vm349_vm4, %v541_v31, %v543_v42  ;;  %v718_v49 = vshrl.u32 %v2362_v47, 16  ;;  %v721_v50 = vshll.u32 %v2362_v47, 16 }
  0x27   :  { %v706_v39 = vor.u32 %v705_v35, %v702_v34  ;;  %v545_v51 = vrot.slane %v2362_v47, 1  ;;  %v727_v58 = vshrl.u32 %v2378_v56, 16  ;;  %v876_v22 = vrot.slane %v2305_v12, 2  ;;  %v2447_v12 = vld [vmem:[%s2793_s0 + $0x10] sm:$0xff]   ;;  %v2467_v34 = vld [vmem:[%s2793_s0 + $0x18] sm:$0xff]  }
  0x28   :  { %v715_v48 = vor.u32 %v714_v45, %v711_v44  ;;  %v720_v53 = vrot.slane %v718_v49, 1  ;;  %v723_v54 = vrot.slane %v721_v50, 2  ;;  %vm874_vm6 = vcmask 1045504   ;;  %v2498_v44 = vld [vmem:[%s2793_s0 + $0x28] sm:$0xff]   ;;  %v2513_v49 = vld [vmem:[%s2793_s0 + $0x30] sm:$0xff]  }
  0x29   :  { %v707_v43 = vsel %vm681_vm5, %v697_v28, %v706_v39  ;;  %v546_v55 = vsel %vm349_vm4, %v543_v42, %v545_v51  ;;  %v1064_v30 = vrot.slane %v2447_v12, 2  ;;  %v878_v31 = vrot.slane %v2323_v25, 2 }
  0x2a   :  { %v716_v52 = vsel %vm681_vm5, %v706_v39, %v715_v48  ;;  %v724_v57 = vor.u32 %v723_v54, %v720_v53  ;;  %v1066_v25 = vrot.slane %v2467_v34, 2  ;;  %v1068_v42 = vrot.slane %v2483_v40, 2  ;;  %v2527_v53 = vld [vmem:[%s2793_s0 + $0x38] sm:$0xf]  ;;  %v1026_v54 = vld [vmem:[%s2793_s0 + $0x3c] sm:$0x3] }
  0x2b   :  { %1800 = vmatmul.mubr.msk.bf16.gmra.mrb[16].mxu1 %vm123_vm3, %v2122_v1  ;;  %v357_v1 = vrot.slane %v2146_v8, 1  ;;  %v879_v35 = vsel %vm874_vm6, %v876_v22, %v878_v31  ;;  %vm1206_vm7 = vsmask.f32 5376  ;;  %vm1399_vm8 = vcmask 1044480  }
  0x2c   :  { %1826 = vmatmul.mubr.msk.bf16.vlgmr.msra.gmra.mrb[16].mxu0 %vm123_vm3, %v352_v59  ;;  %1803 = vmatprep.mubr.msk.bf16.mxu1 %vm2092_vm2, %v2091_v2  ;;  %v730_v59 = vshll.u32 %v2378_v56, 16  ;;  %v1067_v39 = vsel %vm874_vm6, %v1064_v30, %v1066_v25 }
  0x2d   :  { %1884 = vmatpush3.bf16.msra.mxu0 %v766_v60  ;;  %1829 = vmatprep.mubr.msk.bf16.mxu0 %vm2092_vm2, %v2091_v2  ;;  %v358_v3 = vsel %vm349_vm4, %v355_v63, %v357_v1  ;;  %v360_v5 = vsel %vm349_vm4, %v357_v1, %v359_v4  ;;  %v547_v60 = vrot.slane %v2378_v56, 1  ;;  %v501_v63 = vld [vmem:[%s2793_s0 + $0x38] sm:$0x1] }
  0x2e   :  { %1943 = vmatprep.subr.bf16.mxu0 %v2091_v2  ;;  %v732_v4 = vrot.slane %v730_v59, 2 }
  0x33   :  { %1804 = vmatmul.mubr.msk.bf16.gmra.mrb[20].mxu1 %vm123_vm3, %v2170_v21 }
  0x34   :  { %1830 = vmatmul.mubr.msk.bf16.gmra.mrb[20].mxu0 %vm123_vm3, %v354_v62  ;;  %1807 = vmatprep.mubr.msk.bf16.mxu1 %vm2092_vm2, %v2091_v2  ;;  %v500_v62 = vld [vmem:[%s2793_s0 + $0x34] sm:$0xf] }
  0x35   :  { %1833 = vmatprep.mubr.msk.bf16.mxu0 %vm2092_vm2, %v2091_v2  ;;  %v2399_v1 = vcombine.low %v500_v62, %v676_v61  ;;  %v1216_v61 = vshrl.u32 %v2447_v12, 16 }
  0x3b   :  { %1808 = vmatmul.mubr.msk.bf16.gmra.mrb[24].mxu1 %vm123_vm3, %v2195_v37  ;;  %v1098_v37 = vsel %vm145_vm0, %v1027_v32, 0  ;;  %v1395_v32 = vld [vmem:[%s2794_s1 + $0x20] sm:$0xf] }
  0x3c   :  { %1834 = vmatmul.mubr.msk.bf16.gmra.mrb[24].mxu0 %vm123_vm3, %v356_v0  ;;  %1811 = vmatprep.mubr.msk.bf16.mxu1 %vm2092_vm2, %v2091_v2  ;;  %v725_v0 = vsel %vm681_vm5, %v715_v48, %v724_v57 }
  0x3d   :  { %1837 = vmatprep.mubr.msk.bf16.mxu0 %vm2092_vm2, %v2091_v2 }
  0x43   :  { %1812 = vmatmul.mubr.msk.bf16.gmra.mrb[28].mxu1 %vm123_vm3, %v2146_v8  ;;  %v2296_v8 = vld [vmem:[%s2793_s0 + $0x8] sm:$0xf] }
  0x44   :  { %1838 = vmatmul.mubr.msk.bf16.gmra.mrb[28].mxu0 %vm123_vm3, %v358_v3  ;;  %1815 = vmatprep.mubr.msk.bf16.mxu1 %vm2092_vm2, %v2091_v2  ;;  %v729_v3 = vrot.slane %v727_v58, 1 }
  0x45   :  { %1841 = vmatprep.mubr.msk.bf16.mxu0 %vm2092_vm2, %v2091_v2 }
  0x4b   :  { %1816 = vmatmul.mubr.msk.bf16.gmra.mrb[32].mxu1 %vm123_vm3, %v2155_v11  ;;  %v1630_v11 = vcombine.low %v488_v7, %v2296_v8  ;;  %v733_v7 = vor.u32 %v732_v4, %v729_v3  ;;  %v1218_v3 = vrot.slane %v1216_v61, 2 }
  0x4c   :  { %1842 = vmatmul.mubr.msk.bf16.gmra.mrb[32].mxu0 %vm123_vm3, %v360_v5  ;;  %1819 = vmatprep.mubr.msk.bf16.mxu1 %vm2092_vm2, %v2091_v2  ;;  %v548_v5 = vsel %vm349_vm4, %v545_v51, %v547_v60  ;;  %v1072_v51 = vrot.slane %v2513_v49, 2 }
  0x4d   :  { %1845 = vmatprep.mubr.msk.bf16.mxu0 %vm2092_vm2, %v2091_v2  ;;  %v683_v13 = vshrl.u32 %v1630_v11, 16  ;;  %v686_v14 = vshll.u32 %v1630_v11, 16  ;;  %v538_v17 = vrot.slane %v1630_v11, 1 }
  0x4f   :  { %v685_v20 = vrot.slane %v683_v13, 1  ;;  %v688_v21 = vrot.slane %v686_v14, 2  ;;  %v540_v24 = vsel %vm349_vm4, %v538_v17, %v539_v18  ;;  %v734_v13 = vsel %vm681_vm5, %v724_v57, %v733_v7  ;;  %v869_v18 = vld [vmem:[%s2793_s0 + $0x4] sm:$0xc] }
  0x51   :  { %v689_v27 = vor.u32 %v688_v21, %v685_v20  ;;  %v1652_v20 = vcombine.low %v869_v18, %v2296_v8  ;;  %v2436_v8 = vld [vmem:[%s2793_s0 + $0xc] sm:$0xf] }
  0x53   :  { %1820 = vmatmul.mubr.msk.bf16.gmra.mrb[36].mxu1 %vm123_vm3, %v1614_v9  ;;  %v698_v33 = vsel %vm681_vm5, %v689_v27, %v697_v28  ;;  %v736_v9 = vshrl.u32 %v2399_v1, 16  ;;  %v875_v21 = vrot.slane %v1652_v20, 2  ;;  %v1237_v20 = vshll.u32 %v2483_v40, 16 }
  0x54   :  { %1846 = vmatmul.mubr.msk.bf16.gmra.mrb[36].mxu0 %vm123_vm3, %v362_v10  ;;  %1855 = vmatprep.mubr.msk.bf16.mxu1 %vm2092_vm2, %v2091_v2  ;;  %v739_v10 = vshll.u32 %v2399_v1, 16 }
  0x55   :  { %1849 = vmatprep.mubr.msk.bf16.mxu0 %vm2092_vm2, %v2091_v2  ;;  %v738_v14 = vrot.slane %v736_v9, 1  ;;  %v877_v27 = vsel %vm874_vm6, %v875_v21, %v876_v22  ;;  %v1228_v9 = vshll.u32 %v2467_v34, 16 }
  0x56   :  { %v741_v15 = vrot.slane %v739_v10, 2  ;;  %v1394_v10 = vld [vmem:[%s2793_s0 + $0x8] sm:$0x8] }
  0x58   :  { %v742_v17 = vor.u32 %v741_v15, %v738_v14  ;;  %v1230_v15 = vrot.slane %v1228_v9, 3 }
  0x5a   :  { %v743_v19 = vsel %vm681_vm5, %v733_v7, %v742_v17  ;;  %v1225_v7 = vshrl.u32 %v2467_v34, 16 }
  0x5b   :  { %1856 = vmatmul.mubr.msk.bf16.vlgmr.msra.gmra.mrb[40].mxu1 %vm123_vm3, %v540_v24  ;;  %v1202_v24 = vld [vmem:[%s2794_s1 + $0x1c] sm:$0xf] }
  0x5c   :  { %1850 = vmatmul.mubr.msk.bf16.gmra.mrb[40].mxu0 %vm123_vm3, %v361_v6  ;;  %1914 = vmatpush3.bf16.msra.mxu1 %v910_v26  ;;  %v1636_v6 = vcombine.low %v500_v62, %v501_v63  ;;  %v2442_v26 = vcombine.low %v1013_v23, %v2436_v8  ;;  %v1291_v28 = vsel %vm145_vm0, %v1202_v24, 0  ;;  %v1219_v62 = vshll.u32 %v2447_v12, 16 }
  0x5d   :  { %1885 = vmatprep.mubr.msk.bf16.mxu0 %vm2092_vm2, %v2091_v2  ;;  %1859 = vmatprep.mubr.msk.bf16.mxu1 %vm2092_vm2, %v2091_v2  ;;  %v1227_v14 = vrot.slane %v1225_v7, 2  ;;  %v1403_v24 = vrot.slane %v2467_v34, 3  ;;  %v1252_v34 = vshrl.u32 %v2513_v49, 16 }
  0x5e   :  { %1973 = vmatprep.subr.bf16.mxu1 %v2091_v2  ;;  %v549_v11 = vrot.slane %v1636_v6, 1  ;;  %v1063_v29 = vrot.slane %v2442_v26, 2  ;;  %v1208_v59 = vshrl.u32 %v2442_v26, 16  ;;  %v1221_v4 = vrot.slane %v1219_v62, 3 }
  0x5f   :  { %v1231_v18 = vor.u32 %v1230_v15, %v1227_v14 }
  0x60   :  { %v550_v16 = vsel %vm349_vm4, %v547_v60, %v549_v11  ;;  %v1211_v60 = vshll.u32 %v2442_v26, 16  ;;  %v1222_v6 = vor.u32 %v1221_v4, %v1218_v3  ;;  %v1409_v3 = vrot.slane %v2513_v49, 3 }
  0x62   :  { %v1232_v22 = vsel %vm1206_vm7, %v1222_v6, %v1231_v18 }
  0x63   :  { %1860 = vmatmul.mubr.msk.bf16.gmra.mrb[44].mxu1 %vm123_vm3, %v542_v36  ;;  %v1435_v36 = vsel %vm145_vm0, %v1395_v32, 0  ;;  %v1405_v32 = vrot.slane %v2483_v40, 3 }
  0x64   :  { %1886 = vmatmul.mubr.msk.bf16.vlgmr.msra.gmra.mrb[44].mxu0 %vm123_vm3, %v698_v33  ;;  %1863 = vmatprep.mubr.msk.bf16.mxu1 %vm2092_vm2, %v2091_v2  ;;  %v1065_v33 = vsel %vm874_vm6, %v1063_v29, %v1064_v30 }
  0x65   :  { %1944 = vmatpush3.bf16.msra.mxu0 %v1098_v37  ;;  %1889 = vmatprep.mubr.msk.bf16.mxu0 %vm2092_vm2, %v2091_v2  ;;  %v880_v37 = vrot.slane %v2345_v38, 2  ;;  %v882_v38 = vrot.slane %v2362_v47, 2  ;;  %v884_v47 = vrot.slane %v2378_v56, 2  ;;  %v1666_v56 = vcombine.low %v2527_v53, %v1026_v54 }
  0x66   :  { %2003 = vmatprep.subr.bf16.mxu0 %v2091_v2 }
  0x67   :  { %v881_v41 = vsel %vm874_vm6, %v878_v31, %v880_v37  ;;  %v883_v45 = vsel %vm874_vm6, %v880_v37, %v882_v38  ;;  %v885_v50 = vsel %vm874_vm6, %v882_v38, %v884_v47  ;;  %v1074_v58 = vrot.slane %v1666_v56, 2 }
  0x69   :  { %v1075_v63 = vsel %vm874_vm6, %v1072_v51, %v1074_v58 }
  0x6b   :  { %1864 = vmatmul.mubr.msk.bf16.gmra.mrb[48].mxu1 %vm123_vm3, %v544_v46  ;;  %v1070_v46 = vrot.slane %v2498_v44, 2 }
  0x6c   :  { %1890 = vmatmul.mubr.msk.bf16.gmra.mrb[48].mxu0 %vm123_vm3, %v707_v43  ;;  %1867 = vmatprep.mubr.msk.bf16.mxu1 %vm2092_vm2, %v2091_v2  ;;  %v1069_v43 = vsel %vm874_vm6, %v1066_v25, %v1068_v42 }
  0x6d   :  { %1893 = vmatprep.mubr.msk.bf16.mxu0 %vm2092_vm2, %v2091_v2  ;;  %v1071_v48 = vsel %vm874_vm6, %v1068_v42, %v1070_v46 }
  0x73   :  { %1868 = vmatmul.mubr.msk.bf16.gmra.mrb[52].mxu1 %vm123_vm3, %v546_v55  ;;  %v1073_v55 = vsel %vm874_vm6, %v1070_v46, %v1072_v51  ;;  %v1407_v51 = vrot.slane %v2498_v44, 3 }
  0x74   :  { %1894 = vmatmul.mubr.msk.bf16.gmra.mrb[52].mxu0 %vm123_vm3, %v716_v52  ;;  %1871 = vmatprep.mubr.msk.bf16.mxu1 %vm2092_vm2, %v2091_v2  ;;  %v886_v52 = vrot.slane %v2399_v1, 2  ;;  %v1213_v1 = vrot.slane %v1211_v60, 3 }
  0x75   :  { %1897 = vmatprep.mubr.msk.bf16.mxu0 %vm2092_vm2, %v2091_v2  ;;  %v1408_v60 = vsel %vm1399_vm8, %v1405_v32, %v1407_v51 }
  0x76   :  { %v887_v57 = vsel %vm874_vm6, %v884_v47, %v886_v52  ;;  %v1254_v47 = vrot.slane %v1252_v34, 2 }
  0x7b   :  { %1872 = vmatmul.mubr.msk.bf16.gmra.mrb[56].mxu1 %vm123_vm3, %v548_v5 }
  0x7c   :  { %1898 = vmatmul.mubr.msk.bf16.gmra.mrb[56].mxu0 %vm123_vm3, %v725_v0  ;;  %1875 = vmatprep.mubr.msk.bf16.mxu1 %vm2092_vm2, %v2091_v2  ;;  %v1210_v0 = vrot.slane %v1208_v59, 2 }
  0x7d   :  { %1901 = vmatprep.mubr.msk.bf16.mxu0 %vm2092_vm2, %v2091_v2 }
  0x7e   :  { %v1214_v5 = vor.u32 %v1213_v1, %v1210_v0 }
  0x83   :  { %1876 = vmatmul.mubr.msk.bf16.gmra.mrb[60].mxu1 %vm123_vm3, %v550_v16 }
  0x84   :  { %1902 = vmatmul.mubr.msk.bf16.gmra.mrb[60].mxu0 %vm123_vm3, %v734_v13  ;;  %1879 = vmatprep.mubr.msk.bf16.mxu1 %vm2092_vm2, %v2091_v2  ;;  %v1223_v13 = vsel %vm1206_vm7, %v1214_v5, %v1222_v6 }
  0x85   :  { %1905 = vmatprep.mubr.msk.bf16.mxu0 %vm2092_vm2, %v2091_v2 }
  0x8b   :  { %1880 = vmatmul.mubr.msk.bf16.gmra.mrb[64].mxu1 %vm123_vm3, %v549_v11  ;;  %v1682_v11 = vcombine.low %v1394_v10, %v2436_v8  ;;  %v1239_v8 = vrot.slane %v1237_v20, 3 }
  0x8c   :  { %1906 = vmatmul.mubr.msk.bf16.gmra.mrb[64].mxu0 %vm123_vm3, %v743_v19  ;;  %1915 = vmatprep.mubr.msk.bf16.mxu1 %vm2092_vm2, %v2091_v2  ;;  %v1234_v19 = vshrl.u32 %v2483_v40, 16  ;;  %v1406_v40 = vsel %vm1399_vm8, %v1403_v24, %v1405_v32 }
  0x8d   :  { %1909 = vmatprep.mubr.msk.bf16.mxu0 %vm2092_vm2, %v2091_v2  ;;  %v1400_v16 = vrot.slane %v1682_v11, 3  ;;  %v1410_v11 = vsel %vm1399_vm8, %v1407_v51, %v1409_v3 }
  0x8e   :  { %v1236_v23 = vrot.slane %v1234_v19, 2 }
  0x90   :  { %v1240_v26 = vor.u32 %v1239_v8, %v1236_v23 }
  0x92   :  { %v1241_v29 = vsel %vm1206_vm7, %v1231_v18, %v1240_v26 }
  0x93   :  { %1916 = vmatmul.mubr.msk.bf16.vlgmr.msra.gmra.mrb[68].mxu1 %vm123_vm3, %v877_v27  ;;  %v1246_v27 = vshll.u32 %v2498_v44, 16 }
  0x94   :  { %1910 = vmatmul.mubr.msk.bf16.gmra.mrb[68].mxu0 %vm123_vm3, %v742_v17  ;;  %1974 = vmatpush3.bf16.msra.mxu1 %v1291_v28  ;;  %v1401_v17 = vrot.slane %v2447_v12, 3  ;;  %v1243_v12 = vshrl.u32 %v2498_v44, 16 }
  0x95   :  { %1945 = vmatprep.mubr.msk.bf16.mxu0 %vm2092_vm2, %v2091_v2  ;;  %1919 = vmatprep.mubr.msk.bf16.mxu1 %vm2092_vm2, %v2091_v2  ;;  %v1248_v31 = vrot.slane %v1246_v27, 3 }
  0x96   :  { %v1402_v21 = vsel %vm1399_vm8, %v1400_v16, %v1401_v17  ;;  %v1404_v28 = vsel %vm1399_vm8, %v1401_v17, %v1403_v24  ;;  %v1245_v30 = vrot.slane %v1243_v12, 2 }
  0x9b   :  { %1920 = vmatmul.mubr.msk.bf16.gmra.mrb[72].mxu1 %vm123_vm3, %v879_v35  ;;  %v1255_v35 = vshll.u32 %v2513_v49, 16 }
  0x9c   :  { %1946 = vmatmul.mubr.msk.bf16.vlgmr.msra.gmra.mrb[72].mxu0 %vm123_vm3, %v1065_v33  ;;  %1923 = vmatprep.mubr.msk.bf16.mxu1 %vm2092_vm2, %v2091_v2  ;;  %v1249_v33 = vor.u32 %v1248_v31, %v1245_v30 }
  0x9d   :  { %2004 = vmatpush3.bf16.msra.mxu0 %v1435_v36  ;;  %1949 = vmatprep.mubr.msk.bf16.mxu0 %vm2092_vm2, %v2091_v2  ;;  %v1201_v36 = vld [vmem:[%s2793_s0 + $0x3c] sm:$0x7] }
  0x9e   :  { %v2597_v38 = vcombine.low %v2527_v53, %v1201_v36  ;;  %v1250_v46 = vsel %vm1206_vm7, %v1240_v26, %v1249_v33 }
  0xa0   :  { %v1261_v53 = vshrl.u32 %v2597_v38, 16  ;;  %v1264_v54 = vshll.u32 %v2597_v38, 16  ;;  %v1411_v49 = vrot.slane %v2597_v38, 3 }
  0xa2   :  { %v1266_v0 = vrot.slane %v1264_v54, 3  ;;  %v1412_v23 = vsel %vm1399_vm8, %v1409_v3, %v1411_v49 }
  0xa3   :  { %1924 = vmatmul.mubr.msk.bf16.gmra.mrb[76].mxu1 %vm123_vm3, %v881_v41 }
  0xa4   :  { %1950 = vmatmul.mubr.msk.bf16.gmra.mrb[76].mxu0 %vm123_vm3, %v1067_v39  ;;  %1927 = vmatprep.mubr.msk.bf16.mxu1 %vm2092_vm2, %v2091_v2 }
  0xa5   :  { %1953 = vmatprep.mubr.msk.bf16.mxu0 %vm2092_vm2, %v2091_v2 }
  0xab   :  { %1928 = vmatmul.mubr.msk.bf16.gmra.mrb[80].mxu1 %vm123_vm3, %v883_v45 }
  0xac   :  { %1954 = vmatmul.mubr.msk.bf16.gmra.mrb[80].mxu0 %vm123_vm3, %v1069_v43  ;;  %1931 = vmatprep.mubr.msk.bf16.mxu1 %vm2092_vm2, %v2091_v2 }
  0xad   :  { %1957 = vmatprep.mubr.msk.bf16.mxu0 %vm2092_vm2, %v2091_v2 }
  0xb3   :  { %1932 = vmatmul.mubr.msk.bf16.gmra.mrb[84].mxu1 %vm123_vm3, %v885_v50 }
  0xb4   :  { %1958 = vmatmul.mubr.msk.bf16.gmra.mrb[84].mxu0 %vm123_vm3, %v1071_v48  ;;  %1935 = vmatprep.mubr.msk.bf16.mxu1 %vm2092_vm2, %v2091_v2  ;;  %v1257_v48 = vrot.slane %v1255_v35, 3 }
  0xb5   :  { %1961 = vmatprep.mubr.msk.bf16.mxu0 %vm2092_vm2, %v2091_v2 }
  0xbb   :  { %1936 = vmatmul.mubr.msk.bf16.gmra.mrb[88].mxu1 %vm123_vm3, %v887_v57 }
  0xbc   :  { %1962 = vmatmul.mubr.msk.bf16.gmra.mrb[88].mxu0 %vm123_vm3, %v1073_v55  ;;  %1939 = vmatprep.mubr.msk.bf16.mxu1 %vm2092_vm2, %v2091_v2 }
  0xbd   :  { %1965 = vmatprep.mubr.msk.bf16.mxu0 %vm2092_vm2, %v2091_v2 }
  0xc3   :  { %1940 = vmatmul.mubr.msk.bf16.gmra.mrb[92].mxu1 %vm123_vm3, %v886_v52  ;;  %v1258_v52 = vor.u32 %v1257_v48, %v1254_v47 }
  0xc4   :  { %1966 = vmatmul.mubr.msk.bf16.gmra.mrb[92].mxu0 %vm123_vm3, %v1075_v63  ;;  %1975 = vmatprep.mubr.msk.bf16.mxu1 %vm2092_vm2, %v2091_v2  ;;  %v1263_v63 = vrot.slane %v1261_v53, 2 }
  0xc5   :  { %1969 = vmatprep.mubr.msk.bf16.mxu0 %vm2092_vm2, %v2091_v2  ;;  %v1259_v44 = vsel %vm1206_vm7, %v1249_v33, %v1258_v52 }
  0xc6   :  { %v1267_v4 = vor.u32 %v1266_v0, %v1263_v63 }
  0xc8   :  { %v1268_v15 = vsel %vm1206_vm7, %v1258_v52, %v1267_v4 }
  0xcb   :  { %1976 = vmatmul.mubr.msk.bf16.vlgmr.msra.gmra.mrb[96].mxu1 %vm123_vm3, %v1223_v13 }
  0xcc   :  { %1970 = vmatmul.mubr.msk.bf16.gmra.mrb[96].mxu0 %vm123_vm3, %v1074_v58  ;;  %1979 = vmatprep.mubr.msk.bf16.mxu1 %vm2092_vm2, %v2091_v2 }
  0xcd   :  { %2005 = vmatprep.mubr.msk.bf16.mxu0 %vm2092_vm2, %v2091_v2 }
  0xd3   :  { %1980 = vmatmul.mubr.msk.bf16.gmra.mrb[100].mxu1 %vm123_vm3, %v1232_v22 }
  0xd4   :  { %2006 = vmatmul.mubr.msk.bf16.vlgmr.msra.gmra.mrb[100].mxu0 %vm123_vm3, %v1402_v21  ;;  %1983 = vmatprep.mubr.msk.bf16.mxu1 %vm2092_vm2, %v2091_v2 }
  0xd5   :  { %2009 = vmatprep.mubr.msk.bf16.mxu0 %vm2092_vm2, %v2091_v2 }
  0xdb   :  { %1984 = vmatmul.mubr.msk.bf16.gmra.mrb[104].mxu1 %vm123_vm3, %v1241_v29 }
  0xdc   :  { %2010 = vmatmul.mubr.msk.bf16.gmra.mrb[104].mxu0 %vm123_vm3, %v1404_v28  ;;  %1987 = vmatprep.mubr.msk.bf16.mxu1 %vm2092_vm2, %v2091_v2 }
  0xdd   :  { %2013 = vmatprep.mubr.msk.bf16.mxu0 %vm2092_vm2, %v2091_v2 }
  0xde   :  { %v2593_v39 = vpop.f32.mrb[0].mxu1 }
  0xdf   :  { %v183_v25 = vpop.f32.mrb[0].mxu0  ;;  %v1783_v42 = vpop.f32.mrb[1].mxu1 }
  0xe0   :  { %v1767_v37 = vpop.f32.mrb[1].mxu0  ;;  %v2599_v45 = vpop.f32.mrb[2].mxu1 }
  0xe1   :  { %v186_v41 = vpop.f32.mrb[2].mxu0  ;;  %v1784_v50 = vpop.f32.mrb[3].mxu1 }
  0xe2   :  { %v1768_v43 = vpop.f32.mrb[3].mxu0 }
  0xe3   :  { %1988 = vmatmul.mubr.msk.bf16.gmra.mrb[108].mxu1 %vm123_vm3, %v1250_v46 }
  0xe4   :  { %2014 = vmatmul.mubr.msk.bf16.gmra.mrb[108].mxu0 %vm123_vm3, %v1406_v40  ;;  %1991 = vmatprep.mubr.msk.bf16.mxu1 %vm2092_vm2, %v2091_v2 }
  0xe5   :  { %2017 = vmatprep.mubr.msk.bf16.mxu0 %vm2092_vm2, %v2091_v2 }
  0xe6   :  { %v2611_v57 = vpop.f32.mrb[4].mxu1 }
  0xe7   :  { %v191_v55 = vpop.f32.mrb[4].mxu0  ;;  %v1787_v59 = vpop.f32.mrb[5].mxu1 }
  0xe8   :  { %v1771_v56 = vpop.f32.mrb[5].mxu0  ;;  %v2614_v62 = vpop.f32.mrb[6].mxu1 }
  0xe9   :  { %v194_v58 = vpop.f32.mrb[6].mxu0  ;;  %v1788_v1 = vpop.f32.mrb[7].mxu1 }
  0xea   :  { %v1772_v61 = vpop.f32.mrb[7].mxu0 }
  0xeb   :  { %1992 = vmatmul.mubr.msk.bf16.gmra.mrb[112].mxu1 %vm123_vm3, %v1259_v44 }
  0xec   :  { %2018 = vmatmul.mubr.msk.bf16.gmra.mrb[112].mxu0 %vm123_vm3, %v1408_v60  ;;  %1995 = vmatprep.mubr.msk.bf16.mxu1 %vm2092_vm2, %v2091_v2 }
  0xed   :  { %2021 = vmatprep.mubr.msk.bf16.mxu0 %vm2092_vm2, %v2091_v2 }
  0xee   :  { %v2624_v7 = vpop.f32.mrb[8].mxu1 }
  0xef   :  { %v199_v5 = vpop.f32.mrb[8].mxu0  ;;  %v1791_v10 = vpop.f32.mrb[9].mxu1 }
  0xf0   :  { %v1775_v6 = vpop.f32.mrb[9].mxu0  ;;  %v234_v14 = vpop.f32.mrb[10].mxu1 }
  0xf1   :  { %v202_v9 = vpop.f32.mrb[10].mxu0  ;;  %v1792_v16 = vpop.f32.mrb[11].mxu1 }
  0xf2   :  { %v1776_v13 = vpop.f32.mrb[11].mxu0 }
  0xf3   :  { %1996 = vmatmul.mubr.msk.bf16.gmra.mrb[116].mxu1 %vm123_vm3, %v1268_v15 }
  0xf4   :  { %2022 = vmatmul.mubr.msk.bf16.gmra.mrb[116].mxu0 %vm123_vm3, %v1410_v11  ;;  %1999 = vmatprep.mubr.msk.bf16.mxu1 %vm2092_vm2, %v2091_v2 }
  0xf5   :  { %2025 = vmatprep.mubr.msk.bf16.mxu0 %vm2092_vm2, %v2091_v2 }
  0xf6   :  { %v290_v18 = vpop.f32.mrb[12].mxu1 }
  0xf7   :  { %v207_v17 = vpop.f32.mrb[12].mxu0  ;;  %v291_v20 = vadd.f32 %v290_v18, %v183_v25  ;;  %v1797_v21 = vpop.f32.mrb[13].mxu1 }
  0xf8   :  { %v1779_v19 = vpop.f32.mrb[13].mxu0  ;;  %v293_v8 = vpop.f32.mrb[14].mxu1 }
  0xf9   :  { %v210_v22 = vpop.f32.mrb[14].mxu0  ;;  %v294_v26 = vadd.f32 %v293_v8, %v186_v41  ;;  %v1798_v12 = vpop.f32.mrb[15].mxu1 }
  0xfa   :  { %v1780_v24 = vpop.f32.mrb[15].mxu0 }
  0xfb   :  { %2000 = vmatmul.mubr.msk.bf16.gmra.mrb[120].mxu1 %vm123_vm3, %v1267_v4 }
  0xfc   :  { %2026 = vmatmul.mubr.msk.bf16.gmra.mrb[120].mxu0 %vm123_vm3, %v1412_v23 }
  0xfd   :  { %2029 = vmatprep.mubr.msk.bf16.mxu0 %vm2092_vm2, %v2091_v2 }
  0xfe   :  { %v298_v28 = vpop.f32.mrb[16].mxu1 }
  0xff   :  { %v421_v27 = vpop.f32.mrb[16].mxu0  ;;  %v299_v31 = vadd.f32 %v298_v28, %v191_v55  ;;  %v1801_v32 = vpop.f32.mrb[17].mxu1 }
 0x100   :  { %v2640_v29 = vadd.f32 %v421_v27, %v291_v20  ;;  %v1827_v30 = vpop.f32.mrb[17].mxu0  ;;  %v301_v34 = vpop.f32.mrb[18].mxu1 }
 0x101   :  { %v424_v33 = vpop.f32.mrb[18].mxu0  ;;  %v302_v25 = vadd.f32 %v301_v34, %v194_v58  ;;  %v1802_v37 = vpop.f32.mrb[19].mxu1 }
 0x102   :  { %v2642_v35 = vadd.f32 %v424_v33, %v294_v26  ;;  %v1828_v36 = vpop.f32.mrb[19].mxu0 }
 0x104   :  { %2030 = vmatmul.mubr.msk.bf16.gmra.mrb[124].mxu0 %vm123_vm3, %v1411_v49 }
 0x106   :  { %v306_v42 = vpop.f32.mrb[20].mxu1 }
 0x107   :  { %v429_v41 = vpop.f32.mrb[20].mxu0  ;;  %v307_v38 = vadd.f32 %v306_v42, %v199_v5  ;;  %v1805_v43 = vpop.f32.mrb[21].mxu1 }
 0x108   :  { %v2645_v40 = vadd.f32 %v429_v41, %v299_v31  ;;  %v1831_v2 = vpop.f32.mrb[21].mxu0  ;;  %v309_v47 = vpop.f32.mrb[22].mxu1 }
 0x109   :  { %v432_v46 = vpop.f32.mrb[22].mxu0  ;;  %v310_v51 = vadd.f32 %v309_v47, %v202_v9  ;;  %v1806_v52 = vpop.f32.mrb[23].mxu1 }
 0x10a   :  { %v2647_v48 = vadd.f32 %v432_v46, %v302_v25  ;;  %v1832_v50 = vpop.f32.mrb[23].mxu0 }
 0x10e   :  { %v314_v54 = vpop.f32.mrb[24].mxu1 }
 0x10f   :  { %v437_v53 = vpop.f32.mrb[24].mxu0  ;;  %v315_v58 = vadd.f32 %v314_v54, %v207_v17  ;;  %v1809_v59 = vpop.f32.mrb[25].mxu1 }
 0x110   :  { %v2649_v55 = vadd.f32 %v437_v53, %v307_v38  ;;  %v1835_v56 = vpop.f32.mrb[25].mxu0  ;;  %v317_v61 = vpop.f32.mrb[26].mxu1 }
 0x111   :  { %v440_v60 = vpop.f32.mrb[26].mxu0  ;;  %v318_v0 = vadd.f32 %v317_v61, %v210_v22  ;;  %v1810_v1 = vpop.f32.mrb[27].mxu1 }
 0x112   :  { %v2651_v44 = vadd.f32 %v440_v60, %v310_v51  ;;  %v1836_v63 = vpop.f32.mrb[27].mxu0 }
 0x116   :  { %v322_v4 = vpop.f32.mrb[28].mxu1 }
 0x117   :  { %v445_v3 = vpop.f32.mrb[28].mxu0  ;;  %v323_v9 = vadd.f32 %v322_v4, %v2593_v39  ;;  %v1813_v10 = vpop.f32.mrb[29].mxu1 }
 0x118   :  { %v2653_v5 = vadd.f32 %v445_v3, %v315_v58  ;;  %v1839_v6 = vpop.f32.mrb[29].mxu0  ;;  %v325_v13 = vpop.f32.mrb[30].mxu1 }
 0x119   :  { %v448_v11 = vpop.f32.mrb[30].mxu0  ;;  %v326_v16 = vadd.f32 %v325_v13, %v2599_v45  ;;  %v1814_v49 = vpop.f32.mrb[31].mxu1 }
 0x11a   :  { %v2656_v14 = vadd.f32 %v448_v11, %v318_v0  ;;  %v1840_v15 = vpop.f32.mrb[31].mxu0 }
 0x11e   :  { %v330_v18 = vpop.f32.mrb[32].mxu1 }
 0x11f   :  { %v453_v17 = vpop.f32.mrb[32].mxu0  ;;  %v331_v21 = vadd.f32 %v330_v18, %v2611_v57  ;;  %v1817_v22 = vpop.f32.mrb[33].mxu1 }
 0x120   :  { %v2659_v19 = vadd.f32 %v453_v17, %v323_v9  ;;  %v1843_v20 = vpop.f32.mrb[33].mxu0  ;;  %v333_v8 = vpop.f32.mrb[34].mxu1 }
 0x121   :  { %v456_v23 = vpop.f32.mrb[34].mxu0  ;;  %v334_v26 = vadd.f32 %v333_v8, %v2614_v62  ;;  %v1818_v12 = vpop.f32.mrb[35].mxu1 }
 0x122   :  { %v2662_v39 = vadd.f32 %v456_v23, %v326_v16  ;;  %v1844_v24 = vpop.f32.mrb[35].mxu0 }
 0x126   :  { %v338_v28 = vpop.f32.mrb[36].mxu1 }
 0x127   :  { %v461_v27 = vpop.f32.mrb[36].mxu0  ;;  %v339_v31 = vadd.f32 %v338_v28, %v2624_v7  ;;  %v1821_v33 = vpop.f32.mrb[37].mxu1 }
 0x128   :  { %v2665_v45 = vadd.f32 %v461_v27, %v331_v21  ;;  %v1847_v30 = vpop.f32.mrb[37].mxu0  ;;  %v341_v36 = vpop.f32.mrb[38].mxu1 }
 0x129   :  { %v464_v32 = vpop.f32.mrb[38].mxu0  ;;  %v1822_v25 = vpop.f32.mrb[39].mxu1 }
 0x12a   :  { %v2668_v34 = vadd.f32 %v464_v32, %v334_v26  ;;  %v1848_v57 = vpop.f32.mrb[39].mxu0 }
 0x12e   :  { %v609_v42 = vpop.f32.mrb[40].mxu1 }
 0x12f   :  { %v469_v37 = vpop.f32.mrb[40].mxu0  ;;  %v663_v2 = vadd.f32 %v609_v42, %v2640_v29  ;;  %v1857_v38 = vpop.f32.mrb[41].mxu1 }
 0x130   :  { %v2670_v41 = vadd.f32 %v469_v37, %v339_v31  ;;  %v1851_v62 = vpop.f32.mrb[41].mxu0  ;;  %v612_v46 = vpop.f32.mrb[42].mxu1 }
 0x131   :  { %v472_v43 = vpop.f32.mrb[42].mxu0  ;;  %v664_v7 = vadd.f32 %v612_v46, %v2642_v35  ;;  %v1858_v50 = vpop.f32.mrb[43].mxu1 }
 0x132   :  { %v1852_v47 = vpop.f32.mrb[43].mxu0 }
 0x136   :  { %v617_v52 = vpop.f32.mrb[44].mxu1 }
 0x137   :  { %v802_v51 = vpop.f32.mrb[44].mxu0  ;;  %v665_v56 = vadd.f32 %v617_v52, %v2645_v40  ;;  %v1861_v58 = vpop.f32.mrb[45].mxu1 }
 0x138   :  { %v2674_v53 = vadd.f32 %v802_v51, %v663_v2  ;;  %v1887_v54 = vpop.f32.mrb[45].mxu0  ;;  %v620_v60 = vpop.f32.mrb[46].mxu1 }
 0x139   :  { %v805_v59 = vpop.f32.mrb[46].mxu0  ;;  %v666_v63 = vadd.f32 %v620_v60, %v2647_v48  ;;  %v1862_v0 = vpop.f32.mrb[47].mxu1 }
 0x13a   :  { %v2677_v61 = vadd.f32 %v805_v59, %v664_v7  ;;  %v1888_v29 = vpop.f32.mrb[47].mxu0 }
 0x13e   :  { %v625_v3 = vpop.f32.mrb[48].mxu1 }
 0x13f   :  { %v810_v1 = vpop.f32.mrb[48].mxu0  ;;  %v667_v6 = vadd.f32 %v625_v3, %v2649_v55  ;;  %v1865_v9 = vpop.f32.mrb[49].mxu1 }
 0x140   :  { %v2680_v35 = vadd.f32 %v810_v1, %v665_v56  ;;  %v1891_v4 = vpop.f32.mrb[49].mxu0  ;;  %v628_v11 = vpop.f32.mrb[50].mxu1 }
 0x141   :  { %v813_v10 = vpop.f32.mrb[50].mxu0  ;;  %v668_v15 = vadd.f32 %v628_v11, %v2651_v44  ;;  %v1866_v16 = vpop.f32.mrb[51].mxu1 }
 0x142   :  { %v2683_v40 = vadd.f32 %v813_v10, %v666_v63  ;;  %v1892_v13 = vpop.f32.mrb[51].mxu0 }
 0x146   :  { %v633_v17 = vpop.f32.mrb[52].mxu1 }
 0x147   :  { %v818_v49 = vpop.f32.mrb[52].mxu0  ;;  %v669_v20 = vadd.f32 %v633_v17, %v2653_v5  ;;  %v1869_v21 = vpop.f32.mrb[53].mxu1 }
 0x148   :  { %v2686_v48 = vadd.f32 %v818_v49, %v667_v6  ;;  %v1895_v18 = vpop.f32.mrb[53].mxu0  ;;  %v636_v23 = vpop.f32.mrb[54].mxu1 }
 0x149   :  { %v821_v22 = vpop.f32.mrb[54].mxu0  ;;  %v670_v24 = vadd.f32 %v636_v23, %v2656_v14  ;;  %v1870_v26 = vpop.f32.mrb[55].mxu1 }
 0x14a   :  { %v2689_v55 = vadd.f32 %v821_v22, %v668_v15  ;;  %v1896_v8 = vpop.f32.mrb[55].mxu0 }
 0x14e   :  { %v641_v27 = vpop.f32.mrb[56].mxu1 }
 0x14f   :  { %v826_v12 = vpop.f32.mrb[56].mxu0  ;;  %v671_v30 = vadd.f32 %v641_v27, %v2659_v19  ;;  %v1873_v31 = vpop.f32.mrb[57].mxu1 }
 0x150   :  { %v2692_v44 = vadd.f32 %v826_v12, %v669_v20  ;;  %v1899_v28 = vpop.f32.mrb[57].mxu0  ;;  %v644_v33 = vpop.f32.mrb[58].mxu1 }
 0x151   :  { %v829_v32 = vpop.f32.mrb[58].mxu0  ;;  %v672_v36 = vadd.f32 %v644_v33, %v2662_v39  ;;  %v1874_v25 = vpop.f32.mrb[59].mxu1 }
 0x152   :  { %v2695_v5 = vadd.f32 %v829_v32, %v670_v24  ;;  %v1900_v57 = vpop.f32.mrb[59].mxu0 }
 0x156   :  { %v649_v42 = vpop.f32.mrb[60].mxu1 }
 0x157   :  { %v834_v37 = vpop.f32.mrb[60].mxu0  ;;  %v673_v2 = vadd.f32 %v649_v42, %v2665_v45  ;;  %v1877_v38 = vpop.f32.mrb[61].mxu1 }
 0x158   :  { %v2698_v14 = vadd.f32 %v834_v37, %v671_v30  ;;  %v1903_v62 = vpop.f32.mrb[61].mxu0  ;;  %v652_v46 = vpop.f32.mrb[62].mxu1 }
 0x159   :  { %v837_v43 = vpop.f32.mrb[62].mxu0  ;;  %v674_v7 = vadd.f32 %v652_v46, %v2668_v34  ;;  %v1878_v50 = vpop.f32.mrb[63].mxu1 }
 0x15a   :  { %v2701_v19 = vadd.f32 %v837_v43, %v672_v36  ;;  %v1904_v47 = vpop.f32.mrb[63].mxu0 }
 0x15e   :  { %v657_v52 = vpop.f32.mrb[64].mxu1 }
 0x15f   :  { %v842_v51 = vpop.f32.mrb[64].mxu0  ;;  %v675_v56 = vadd.f32 %v657_v52, %v2670_v41  ;;  %v1881_v59 = vpop.f32.mrb[65].mxu1 }
 0x160   :  { %v2704_v39 = vadd.f32 %v842_v51, %v673_v2  ;;  %v1907_v54 = vpop.f32.mrb[65].mxu0  ;;  %v660_v29 = vpop.f32.mrb[66].mxu1 }
 0x161   :  { %v845_v58 = vpop.f32.mrb[66].mxu0  ;;  %v1882_v63 = vpop.f32.mrb[67].mxu1 }
 0x162   :  { %v2707_v60 = vadd.f32 %v845_v58, %v674_v7  ;;  %v1908_v45 = vpop.f32.mrb[67].mxu0 }
 0x166   :  { %v946_v3 = vpop.f32.mrb[68].mxu1 }
 0x167   :  { %v850_v0 = vpop.f32.mrb[68].mxu0  ;;  %v1000_v4 = vadd.f32 %v946_v3, %v2674_v53  ;;  %v1917_v6 = vpop.f32.mrb[69].mxu1 }
 0x168   :  { %v2709_v1 = vadd.f32 %v850_v0, %v675_v56  ;;  %v1911_v34 = vpop.f32.mrb[69].mxu0  ;;  %v949_v10 = vpop.f32.mrb[70].mxu1 }
 0x169   :  { %v853_v9 = vpop.f32.mrb[70].mxu0  ;;  %v1001_v41 = vadd.f32 %v949_v10, %v2677_v61  ;;  %v1918_v13 = vpop.f32.mrb[71].mxu1 }
 0x16a   :  { %v1912_v11 = vpop.f32.mrb[71].mxu0 }
 0x16e   :  { %v954_v16 = vpop.f32.mrb[72].mxu1 }
 0x16f   :  { %v1134_v15 = vpop.f32.mrb[72].mxu0  ;;  %v1002_v18 = vadd.f32 %v954_v16, %v2680_v35  ;;  %v1921_v20 = vpop.f32.mrb[73].mxu1 }
 0x170   :  { %v2713_v49 = vadd.f32 %v1134_v15, %v1000_v4  ;;  %v1947_v17 = vpop.f32.mrb[73].mxu0  ;;  %v957_v22 = vpop.f32.mrb[74].mxu1 }
 0x171   :  { %v1137_v21 = vpop.f32.mrb[74].mxu0  ;;  %v1003_v8 = vadd.f32 %v957_v22, %v2683_v40  ;;  %v1922_v24 = vpop.f32.mrb[75].mxu1 }
 0x172   :  { %v2716_v23 = vadd.f32 %v1137_v21, %v1001_v41  ;;  %v1948_v53 = vpop.f32.mrb[75].mxu0 }
 0x176   :  { %v962_v12 = vpop.f32.mrb[76].mxu1 }
 0x177   :  { %v1142_v26 = vpop.f32.mrb[76].mxu0  ;;  %v1004_v28 = vadd.f32 %v962_v12, %v2686_v48  ;;  %v1925_v30 = vpop.f32.mrb[77].mxu1 }
 0x178   :  { %v2719_v61 = vadd.f32 %v1142_v26, %v1002_v18  ;;  %v1951_v27 = vpop.f32.mrb[77].mxu0  ;;  %v965_v32 = vpop.f32.mrb[78].mxu1 }
 0x179   :  { %v1145_v31 = vpop.f32.mrb[78].mxu0  ;;  %v1005_v57 = vadd.f32 %v965_v32, %v2689_v55  ;;  %v1926_v36 = vpop.f32.mrb[79].mxu1 }
 0x17a   :  { %v2722_v35 = vadd.f32 %v1145_v31, %v1003_v8  ;;  %v1952_v33 = vpop.f32.mrb[79].mxu0  ;;  %v2755_v36 = vld [vmem:[%s2795_s2] ss:$0 sm:$0xff]  ;;  %s2093_s2 = smov [#allocation2]  }
 0x17b   :  { %s1589_s13 = sshll.u32 %s2093_s2, 4  ;;  %s1590_s13 = int_to_ptr.vmem [resolvable:$true] %s1589_s13 }
 0x17c   :  { %s2067_s14 = scalar_lea.vmem %s1590_s13, 1664  ;;  %p2072_p1 = scmp.lt.s32.totalorder %s1590_s13, %s1590_s13 }
 0x17d   :  { %p2068_p0 = scmp.ne.s32.totalorder %s1590_s13, %s2067_s14  ;;  %p2073_p2 = scmp.lt.s32.totalorder %s2067_s14, %s2067_s14 }
 0x17e   :  { %v970_v37 = vpop.f32.mrb[80].mxu1 }
 0x17f   :  { %v1150_v25 = vpop.f32.mrb[80].mxu0  ;;  %v1006_v62 = vadd.f32 %v970_v37, %v2692_v44  ;;  %v1929_v2 = vpop.f32.mrb[81].mxu1  ;;  %p2074_p3 = por %p2073_p2, %p2072_p1 }
 0x180   :  { %v2725_v40 = vadd.f32 %v1150_v25, %v1004_v28  ;;  %v1955_v42 = vpop.f32.mrb[81].mxu0  ;;  %v973_v43 = vpop.f32.mrb[82].mxu1 }
 0x181   :  { %v1153_v38 = vpop.f32.mrb[82].mxu0  ;;  %v1007_v47 = vadd.f32 %v973_v43, %v2695_v5  ;;  %v1930_v7 = vpop.f32.mrb[83].mxu1  ;;  %p2075_p4 = pnand %p2074_p3, %p2068_p0 }
 0x182   :  { %v2728_v48 = vadd.f32 %v1153_v38, %v1005_v57  ;;  %v1956_v46 = vpop.f32.mrb[83].mxu0 }
 0x186   :  { %v978_v51 = vpop.f32.mrb[84].mxu1 }
 0x187   :  { %v1158_v50 = vpop.f32.mrb[84].mxu0  ;;  %v1008_v54 = vadd.f32 %v978_v51, %v2698_v14  ;;  %v1933_v56 = vpop.f32.mrb[85].mxu1 }
 0x188   :  { %v2731_v55 = vadd.f32 %v1158_v50, %v1006_v62  ;;  %v1959_v52 = vpop.f32.mrb[85].mxu0  ;;  %v981_v59 = vpop.f32.mrb[86].mxu1 }
 0x189   :  { %v1161_v58 = vpop.f32.mrb[86].mxu0  ;;  %v1009_v29 = vadd.f32 %v981_v59, %v2701_v19  ;;  %v1934_v63 = vpop.f32.mrb[87].mxu1 }
 0x18a   :  { %v2734_v44 = vadd.f32 %v1161_v58, %v1007_v47  ;;  %v1960_v45 = vpop.f32.mrb[87].mxu0 }
 0x18e   :  { %v986_v3 = vpop.f32.mrb[88].mxu1 }
 0x18f   :  { %v1166_v0 = vpop.f32.mrb[88].mxu0  ;;  %v1010_v4 = vadd.f32 %v986_v3, %v2704_v39  ;;  %v1937_v6 = vpop.f32.mrb[89].mxu1 }
 0x190   :  { %v2737_v5 = vadd.f32 %v1166_v0, %v1008_v54  ;;  %v1963_v34 = vpop.f32.mrb[89].mxu0  ;;  %v989_v10 = vpop.f32.mrb[90].mxu1 }
 0x191   :  { %v1169_v9 = vpop.f32.mrb[90].mxu0  ;;  %v1011_v41 = vadd.f32 %v989_v10, %v2707_v60  ;;  %v1938_v13 = vpop.f32.mrb[91].mxu1 }
 0x192   :  { %v2740_v14 = vadd.f32 %v1169_v9, %v1009_v29  ;;  %v1964_v11 = vpop.f32.mrb[91].mxu0 }
 0x196   :  { %v994_v16 = vpop.f32.mrb[92].mxu1 }
 0x197   :  { %v1174_v15 = vpop.f32.mrb[92].mxu0  ;;  %v1012_v18 = vadd.f32 %v994_v16, %v2709_v1  ;;  %v1941_v21 = vpop.f32.mrb[93].mxu1 }
 0x198   :  { %v2743_v19 = vadd.f32 %v1174_v15, %v1010_v4  ;;  %v1967_v17 = vpop.f32.mrb[93].mxu0  ;;  %v997_v53 = vpop.f32.mrb[94].mxu1 }
 0x199   :  { %v1177_v20 = vpop.f32.mrb[94].mxu0  ;;  %v1942_v8 = vpop.f32.mrb[95].mxu1 }
 0x19a   :  { %v2746_v22 = vadd.f32 %v1177_v20, %v1011_v41  ;;  %v1968_v39 = vpop.f32.mrb[95].mxu0 }
 0x19e   :  { %v1327_v12 = vpop.f32.mrb[96].mxu1 }
 0x19f   :  { %v1182_v24 = vpop.f32.mrb[96].mxu0  ;;  %v1381_v27 = vadd.f32 %v1327_v12, %v2713_v49  ;;  %v1977_v28 = vpop.f32.mrb[97].mxu1 }
 0x1a0   :  { %v2748_v26 = vadd.f32 %v1182_v24, %v1012_v18  ;;  %v1971_v60 = vpop.f32.mrb[97].mxu0  ;;  %v1330_v31 = vpop.f32.mrb[98].mxu1 }
 0x1a1   :  { %v1185_v30 = vpop.f32.mrb[98].mxu0  ;;  %v1382_v1 = vadd.f32 %v1330_v31, %v2716_v23  ;;  %v1978_v33 = vpop.f32.mrb[99].mxu1 }
 0x1a2   :  { %v1972_v32 = vpop.f32.mrb[99].mxu0 }
 0x1a6   :  { %v1335_v25 = vpop.f32.mrb[100].mxu1 }
 0x1a7   :  { %v1471_v57 = vpop.f32.mrb[100].mxu0  ;;  %v1383_v62 = vadd.f32 %v1335_v25, %v2719_v61  ;;  %v1981_v2 = vpop.f32.mrb[101].mxu1 }
 0x1a8   :  { %v1525_v37 = vadd.f32 %v1471_v57, %v1381_v27  ;;  %v2007_v42 = vpop.f32.mrb[101].mxu0  ;;  %v1338_v43 = vpop.f32.mrb[102].mxu1 }
 0x1a9   :  { %v1474_v49 = vpop.f32.mrb[102].mxu0  ;;  %v1384_v23 = vadd.f32 %v1338_v43, %v2722_v35  ;;  %v1982_v7 = vpop.f32.mrb[103].mxu1 }
 0x1aa   :  { %v1545_v38 = vadd.f32 %v2755_v36, %v1525_v37  ;;  %v1526_v46 = vadd.f32 %v1474_v49, %v1382_v1  ;;  %v2008_v47 = vpop.f32.mrb[103].mxu0 }
 0x1ac   :  { %v1558_v50 = vmax.f32 %v1545_v38, 0.0  ;;  %v1546_v51 = vadd.f32 %v2755_v36, %v1526_v46 }
 0x1ae   :  { %1571 = vst [vmem:[#allocation2] sm:$0xff] %v1558_v50  ;;  %v1559_v52 = vmax.f32 %v1546_v51, 0.0  ;;  %v1343_v56 = vpop.f32.mrb[104].mxu1 }
 0x1af   :  { %v1479_v54 = vpop.f32.mrb[104].mxu0  ;;  %v1385_v59 = vadd.f32 %v1343_v56, %v2725_v40  ;;  %v1985_v45 = vpop.f32.mrb[105].mxu1 }
 0x1b0   :  { %1572 = vst [vmem:[#allocation2 + $0x8] sm:$0xff] %v1559_v52  ;;  %v1527_v58 = vadd.f32 %v1479_v54, %v1383_v62  ;;  %v2011_v61 = vpop.f32.mrb[105].mxu0  ;;  %v1346_v0 = vpop.f32.mrb[106].mxu1 }
 0x1b1   :  { %v1482_v29 = vpop.f32.mrb[106].mxu0  ;;  %v1386_v34 = vadd.f32 %v1346_v0, %v2728_v48  ;;  %v1986_v4 = vpop.f32.mrb[107].mxu1 }
 0x1b2   :  { %v1547_v63 = vadd.f32 %v2755_v36, %v1527_v58  ;;  %v1528_v3 = vadd.f32 %v1482_v29, %v1384_v23  ;;  %v2012_v35 = vpop.f32.mrb[107].mxu0 }
 0x1b4   :  { %v1560_v6 = vmax.f32 %v1547_v63, 0.0  ;;  %v1548_v9 = vadd.f32 %v2755_v36, %v1528_v3 }
 0x1b6   :  { %1573 = vst [vmem:[#allocation2 + $0x10] sm:$0xff] %v1560_v6  ;;  %v1561_v10 = vmax.f32 %v1548_v9, 0.0  ;;  %v1351_v41 = vpop.f32.mrb[108].mxu1 }
 0x1b7   :  { %v1487_v11 = vpop.f32.mrb[108].mxu0  ;;  %v1387_v15 = vadd.f32 %v1351_v41, %v2731_v55  ;;  %v1989_v16 = vpop.f32.mrb[109].mxu1 }
 0x1b8   :  { %1574 = vst [vmem:[#allocation2 + $0x18] sm:$0xff] %v1561_v10  ;;  %v1529_v13 = vadd.f32 %v1487_v11, %v1385_v59  ;;  %v2015_v40 = vpop.f32.mrb[109].mxu0  ;;  %v1354_v20 = vpop.f32.mrb[110].mxu1 }
 0x1b9   :  { %v1490_v17 = vpop.f32.mrb[110].mxu0  ;;  %v1388_v39 = vadd.f32 %v1354_v20, %v2734_v44  ;;  %v1990_v53 = vpop.f32.mrb[111].mxu1 }
 0x1ba   :  { %v1549_v18 = vadd.f32 %v2755_v36, %v1529_v13  ;;  %v1530_v21 = vadd.f32 %v1490_v17, %v1386_v34  ;;  %v2016_v48 = vpop.f32.mrb[111].mxu0 }
 0x1bc   :  { %v1562_v8 = vmax.f32 %v1549_v18, 0.0  ;;  %v1550_v24 = vadd.f32 %v2755_v36, %v1530_v21 }
 0x1be   :  { %1575 = vst [vmem:[#allocation2 + $0x20] sm:$0xff] %v1562_v8  ;;  %v1563_v12 = vmax.f32 %v1550_v24, 0.0  ;;  %v1359_v27 = vpop.f32.mrb[112].mxu1 }
 0x1bf   :  { %v1495_v60 = vpop.f32.mrb[112].mxu0  ;;  %v1389_v30 = vadd.f32 %v1359_v27, %v2737_v5  ;;  %v1993_v31 = vpop.f32.mrb[113].mxu1 }
 0x1c0   :  { %1576 = vst [vmem:[#allocation2 + $0x28] sm:$0xff] %v1563_v12  ;;  %v1531_v28 = vadd.f32 %v1495_v60, %v1387_v15  ;;  %v2019_v55 = vpop.f32.mrb[113].mxu0  ;;  %v1362_v33 = vpop.f32.mrb[114].mxu1 }
 0x1c1   :  { %v1498_v32 = vpop.f32.mrb[114].mxu0  ;;  %v1390_v25 = vadd.f32 %v1362_v33, %v2740_v14  ;;  %v1994_v37 = vpop.f32.mrb[115].mxu1 }
 0x1c2   :  { %v1551_v1 = vadd.f32 %v2755_v36, %v1531_v28  ;;  %v1532_v57 = vadd.f32 %v1498_v32, %v1388_v39  ;;  %v2020_v44 = vpop.f32.mrb[115].mxu0 }
 0x1c4   :  { %v1564_v42 = vmax.f32 %v1551_v1, 0.0  ;;  %v1552_v62 = vadd.f32 %v2755_v36, %v1532_v57 }
 0x1c6   :  { %1577 = vst [vmem:[#allocation2 + $0x30] sm:$0xff] %v1564_v42  ;;  %v1565_v2 = vmax.f32 %v1552_v62, 0.0  ;;  %v1367_v38 = vpop.f32.mrb[116].mxu1 }
 0x1c7   :  { %v1503_v49 = vpop.f32.mrb[116].mxu0  ;;  %v1391_v46 = vadd.f32 %v1367_v38, %v2743_v19  ;;  %v1997_v47 = vpop.f32.mrb[117].mxu1 }
 0x1c8   :  { %1578 = vst [vmem:[#allocation2 + $0x38] sm:$0xff] %v1565_v2  ;;  %v1533_v43 = vadd.f32 %v1503_v49, %v1389_v30  ;;  %v2023_v5 = vpop.f32.mrb[117].mxu0  ;;  %v1370_v50 = vpop.f32.mrb[118].mxu1 }
 0x1c9   :  { %v1506_v23 = vpop.f32.mrb[118].mxu0  ;;  %v1392_v52 = vadd.f32 %v1370_v50, %v2746_v22  ;;  %v1998_v54 = vpop.f32.mrb[119].mxu1 }
 0x1ca   :  { %v1553_v7 = vadd.f32 %v2755_v36, %v1533_v43  ;;  %v1534_v51 = vadd.f32 %v1506_v23, %v1390_v25  ;;  %v2024_v14 = vpop.f32.mrb[119].mxu0 }
 0x1cc   :  { %v1566_v56 = vmax.f32 %v1553_v7, 0.0  ;;  %v1554_v58 = vadd.f32 %v2755_v36, %v1534_v51 }
 0x1ce   :  { %1579 = vst [vmem:[#allocation2 + $0x40] sm:$0xff] %v1566_v56  ;;  %v1567_v61 = vmax.f32 %v1554_v58, 0.0  ;;  %v1375_v45 = vpop.f32.mrb[120].mxu1 }
 0x1cf   :  { %v1511_v59 = vpop.f32.mrb[120].mxu0  ;;  %v1393_v63 = vadd.f32 %v1375_v45, %v2748_v26  ;;  %v2001_v3 = vpop.f32.mrb[121].mxu1 }
 0x1d0   :  { %1580 = vst [vmem:[#allocation2 + $0x48] sm:$0xff] %v1567_v61  ;;  %v1535_v29 = vadd.f32 %v1511_v59, %v1391_v46  ;;  %v2027_v19 = vpop.f32.mrb[121].mxu0  ;;  %v1378_v22 = vpop.f32.mrb[122].mxu1 }
 0x1d1   :  { %v1514_v0 = vpop.f32.mrb[122].mxu0  ;;  %v2002_v6 = vpop.f32.mrb[123].mxu1 }
 0x1d2   :  { %v1555_v35 = vadd.f32 %v2755_v36, %v1535_v29  ;;  %v1536_v34 = vadd.f32 %v1514_v0, %v1392_v52  ;;  %v2028_v4 = vpop.f32.mrb[123].mxu0 }
 0x1d4   :  { %v1568_v9 = vmax.f32 %v1555_v35, 0.0  ;;  %v1556_v10 = vadd.f32 %v2755_v36, %v1536_v34 }
 0x1d6   :  { %1581 = vst [vmem:[#allocation2 + $0x50] sm:$0xff] %v1568_v9  ;;  %v1569_v11 = vmax.f32 %v1556_v10, 0.0 }
 0x1d7   :  { %v1519_v41 = vpop.f32.mrb[124].mxu0 }
 0x1d8   :  { %1582 = vst [vmem:[#allocation2 + $0x58] sm:$0xff] %v1569_v11  ;;  %v1537_v13 = vadd.f32 %v1519_v41, %v1393_v63  ;;  %v2031_v40 = vpop.f32.mrb[125].mxu0 }
 0x1d9   :  { %v1522_v15 = vpop.f32.mrb[126].mxu0 }
 0x1da   :  { %v1557_v26 = vadd.f32 %v2755_v36, %v1537_v13  ;;  %v2032_v16 = vpop.f32.mrb[127].mxu0 }
 0x1dc   :  { %v1570_v17 = vmax.f32 %v1557_v26, 0.0 }
 0x1de   :  { %1583 = vst [vmem:[#allocation2 + $0x60] sm:$0xff] %v1570_v17 }
 0x1df   :  { %2078 = shalt.err (!%p2075_p4)
}
 0x1e0   :  { %s2079_s17 = scalar_lea.hbm %s2796_s3, 1664 }
 0x1e1   :  { %p2080_p5 = scmp.ne.s32.totalorder %s2796_s3, %s2079_s17  ;;  %p2083_p6 = scmp.lt.u32.totalorder %s2079_s17, %s2796_s3 }
 0x1e3   :  { %p2085_p7 = pnand %p2083_p6, %p2080_p5 }
 0x1e5   :  { %2088 = shalt.err (!%p2085_p7)
}
 0x1e6   :  { %s2094_s22 = smov 128   ;;  %s2095_s23 = smov 8  }
 0x1e7   :  { %1595 = dma.vmem_to_hbm [thread:$0]  %s1590_s13, 1664, %s2796_s3, [#allocation3], %s2094_s22, %s2094_s22, %s2095_s23  }
 0x1e8   :  { %2089 = dma.done.wait [#allocation3], 1664  }
 0x1e9   :  { %2090 = vsyncadd [#allocation3], 4294965632 }
 0x1ea   :  { %1599 = vsyncpa [#allocation3], 1 }

// kernel: tpu_custom_call.1
= control target key start
LH: loop header
LB: loop body
LE: loop exit
PB: predicated region body
PF: predicated region fallthrough
CT: control target
= control target key end

     0   :  { %vm115_vm0 = vcmask 588800   ;;  %s487_s0 = inlined_call_operand.vmem [shape: bf16[128,72], index: 0, kind: input, shape index: {}]   ;;  %s488_s1 = inlined_call_operand.vmem [shape: bf16[72,128], index: 1, kind: input, shape index: {}]   ;;  %s489_s2 = inlined_call_operand.vmem [shape: f32[1,128], index: 2, kind: input, shape index: {}]   ;;  %s490_s3 = inlined_call_operand.hbm [shape: f32[128,128], index: 3, kind: output, shape index: {}]  }
   0x1   :  { %v365_v0 = vld [vmem:[%s488_s1] sm:$0xff]   ;;  %v366_v1 = vld [vmem:[%s488_s1 + $0x8] sm:$0xff]   ;;  %v367_v2 = vld [vmem:[%s488_s1 + $0x10] sm:$0xff]  }
   0x2   :  { %324 = vmatprep.subr.bf16.mxu0 %v365_v0  ;;  %350 = vmatprep.subr.bf16.mxu1 %v365_v0  ;;  %v370_v3 = vld [vmem:[%s487_s0] sm:$0xff]   ;;  %v368_v5 = vld [vmem:[%s488_s1 + $0x18] sm:$0xff]  }
   0x3   :  { %325 = vmatpush3.bf16.msra.mxu0 %v365_v0  ;;  %355 = vmatpush3.bf16.msra.mxu1 %v365_v0  ;;  %v371_v4 = vld [vmem:[%s487_s0 + $0x20] sm:$0xff]  }
   0x4   :  { %326 = vmatprep.subr.bf16.mxu0 %v366_v1  ;;  %351 = vmatprep.subr.bf16.mxu1 %v366_v1  ;;  %v369_v6 = vld [vmem:[%s488_s1 + $0x20] ss:$0 sps:$4 sm:$0xff]  }
   0x5   :  { %334 = vmatprep.mubr.msk.bf16.mxu0 %vm115_vm0, %v370_v3  ;;  %342 = vmatprep.mubr.msk.bf16.mxu1 %vm115_vm0, %v371_v4 }
   0x7   :  { %327 = vmatpush3.bf16.msra.mxu0 %v366_v1  ;;  %356 = vmatpush3.bf16.msra.mxu1 %v366_v1 }
   0x8   :  { %328 = vmatprep.subr.bf16.mxu0 %v367_v2  ;;  %352 = vmatprep.subr.bf16.mxu1 %v367_v2 }
   0xb   :  { %329 = vmatpush3.bf16.msra.mxu0 %v367_v2  ;;  %357 = vmatpush3.bf16.msra.mxu1 %v367_v2 }
   0xc   :  { %330 = vmatprep.subr.bf16.mxu0 %v368_v5  ;;  %353 = vmatprep.subr.bf16.mxu1 %v368_v5 }
   0xd   :  { %8 = vsyncpa [#allocation3], 0  ;;  %vm140_vm1 = vcmask 1043456   ;;  %v372_v8 = vld [vmem:[%s487_s0 + $0x8] sm:$0xff]   ;;  %v374_v10 = vld [vmem:[%s487_s0 + $0x10] sm:$0xff]  }
   0xe   :  { %v142_v7 = vsel %vm140_vm1, %v369_v6, 0  ;;  %v373_v9 = vld [vmem:[%s487_s0 + $0x28] sm:$0xff]   ;;  %v375_v11 = vld [vmem:[%s487_s0 + $0x30] sm:$0xff]   ;;  %v376_v12 = vld [vmem:[%s487_s0 + $0x18] sm:$0xff]  }
   0xf   :  { %331 = vmatpush3.bf16.msra.mxu0 %v368_v5  ;;  %358 = vmatpush3.bf16.msra.mxu1 %v368_v5  ;;  %v377_v13 = vld [vmem:[%s487_s0 + $0x38] sm:$0xff]   ;;  %v289_v14 = vld [vmem:[%s489_s2] ss:$0 sm:$0xff]  ;;  %s402_s0 = smov [#allocation2]  }
  0x10   :  { %360 = vmatprep.subr.msk.bf16.mxu0 %vm140_vm1, %v369_v6  ;;  %361 = vmatprep.subr.msk.bf16.mxu1 %vm140_vm1, %v369_v6  ;;  %s278_s2 = sshll.u32 %s402_s0, 4  ;;  %s279_s2 = int_to_ptr.vmem [resolvable:$true] %s278_s2 }
  0x11   :  { %s378_s12 = scalar_lea.vmem %s279_s2, 2048  ;;  %p383_p1 = scmp.lt.s32.totalorder %s279_s2, %s279_s2 }
  0x12   :  { %p379_p0 = scmp.ne.s32.totalorder %s279_s2, %s378_s12  ;;  %p384_p2 = scmp.lt.s32.totalorder %s378_s12, %s378_s12 }
  0x13   :  { %333 = vmatpush3.bf16.msra.mxu0 %v142_v7  ;;  %359 = vmatpush3.bf16.msra.mxu1 %v142_v7 }
  0x14   :  { %p385_p3 = por %p384_p2, %p383_p1 }
  0x16   :  { %335 = vmatmul.mubr.msk.bf16.vlgmr.msra.gmra.mrb[0].mxu0 %vm115_vm0, %v372_v8  ;;  %343 = vmatmul.mubr.msk.bf16.vlgmr.msra.gmra.mrb[0].mxu1 %vm115_vm0, %v373_v9  ;;  %p386_p4 = pnand %p385_p3, %p379_p0 }
  0x17   :  { %338 = vmatprep.mubr.msk.bf16.mxu0 %vm115_vm0, %v374_v10  ;;  %346 = vmatprep.mubr.msk.bf16.mxu1 %vm115_vm0, %v375_v11 }
  0x1e   :  { %339 = vmatmul.mubr.msk.bf16.gmra.mrb[4].mxu0 %vm115_vm0, %v376_v12  ;;  %347 = vmatmul.mubr.msk.bf16.gmra.mrb[4].mxu1 %vm115_vm0, %v377_v13 }
  0xe9   :  { %v336_v15 = vpop.f32.mrb[0].mxu0  ;;  %v344_v16 = vpop.f32.mrb[0].mxu1 }
  0xea   :  { %v187_v17 = vadd.f32 %v336_v15, %v289_v14  ;;  %v219_v18 = vadd.f32 %v344_v16, %v289_v14  ;;  %v178_v19 = vpop.f32.mrb[1].mxu0  ;;  %v210_v20 = vpop.f32.mrb[1].mxu1 }
  0xeb   :  { %v179_v21 = vadd.f32 %v289_v14, %v178_v19  ;;  %v211_v22 = vadd.f32 %v289_v14, %v210_v20  ;;  %v337_v23 = vpop.f32.mrb[2].mxu0  ;;  %v345_v24 = vpop.f32.mrb[2].mxu1 }
  0xec   :  { %v243_v25 = vmax.f32 %v187_v17, 0.0  ;;  %v251_v26 = vmax.f32 %v219_v18, 0.0  ;;  %v190_v27 = vadd.f32 %v337_v23, %v289_v14  ;;  %v222_v28 = vadd.f32 %v345_v24, %v289_v14  ;;  %v181_v29 = vpop.f32.mrb[3].mxu0  ;;  %v213_v30 = vpop.f32.mrb[3].mxu1 }
  0xed   :  { %v241_v31 = vmax.f32 %v179_v21, 0.0  ;;  %v249_v32 = vmax.f32 %v211_v22, 0.0  ;;  %v182_v33 = vadd.f32 %v289_v14, %v181_v29  ;;  %v214_v34 = vadd.f32 %v289_v14, %v213_v30 }
  0xee   :  { %259 = vst [vmem:[#allocation2 + $0x10] sm:$0xff] %v243_v25  ;;  %267 = vst [vmem:[#allocation2 + $0x50] sm:$0xff] %v251_v26  ;;  %v244_v35 = vmax.f32 %v190_v27, 0.0  ;;  %v252_v36 = vmax.f32 %v222_v28, 0.0 }
  0xef   :  { %257 = vst [vmem:[#allocation2] sm:$0xff] %v241_v31  ;;  %265 = vst [vmem:[#allocation2 + $0x40] sm:$0xff] %v249_v32  ;;  %v242_v37 = vmax.f32 %v182_v33, 0.0  ;;  %v250_v38 = vmax.f32 %v214_v34, 0.0 }
  0xf0   :  { %260 = vst [vmem:[#allocation2 + $0x18] sm:$0xff] %v244_v35  ;;  %268 = vst [vmem:[#allocation2 + $0x58] sm:$0xff] %v252_v36 }
  0xf1   :  { %258 = vst [vmem:[#allocation2 + $0x8] sm:$0xff] %v242_v37  ;;  %266 = vst [vmem:[#allocation2 + $0x48] sm:$0xff] %v250_v38  ;;  %v340_v39 = vpop.f32.mrb[4].mxu0  ;;  %v348_v40 = vpop.f32.mrb[4].mxu1 }
  0xf2   :  { %v203_v41 = vadd.f32 %v340_v39, %v289_v14  ;;  %v235_v42 = vadd.f32 %v348_v40, %v289_v14  ;;  %v194_v43 = vpop.f32.mrb[5].mxu0  ;;  %v226_v44 = vpop.f32.mrb[5].mxu1 }
  0xf3   :  { %v195_v45 = vadd.f32 %v289_v14, %v194_v43  ;;  %v227_v46 = vadd.f32 %v289_v14, %v226_v44  ;;  %v341_v47 = vpop.f32.mrb[6].mxu0  ;;  %v349_v48 = vpop.f32.mrb[6].mxu1 }
  0xf4   :  { %v247_v49 = vmax.f32 %v203_v41, 0.0  ;;  %v255_v50 = vmax.f32 %v235_v42, 0.0  ;;  %v206_v51 = vadd.f32 %v341_v47, %v289_v14  ;;  %v238_v52 = vadd.f32 %v349_v48, %v289_v14  ;;  %v197_v53 = vpop.f32.mrb[7].mxu0  ;;  %v229_v54 = vpop.f32.mrb[7].mxu1 }
  0xf5   :  { %v245_v55 = vmax.f32 %v195_v45, 0.0  ;;  %v253_v56 = vmax.f32 %v227_v46, 0.0  ;;  %v198_v57 = vadd.f32 %v289_v14, %v197_v53  ;;  %v230_v58 = vadd.f32 %v289_v14, %v229_v54 }
  0xf6   :  { %263 = vst [vmem:[#allocation2 + $0x30] sm:$0xff] %v247_v49  ;;  %271 = vst [vmem:[#allocation2 + $0x70] sm:$0xff] %v255_v50  ;;  %v248_v59 = vmax.f32 %v206_v51, 0.0  ;;  %v256_v60 = vmax.f32 %v238_v52, 0.0 }
  0xf7   :  { %261 = vst [vmem:[#allocation2 + $0x20] sm:$0xff] %v245_v55  ;;  %269 = vst [vmem:[#allocation2 + $0x60] sm:$0xff] %v253_v56  ;;  %v246_v61 = vmax.f32 %v198_v57, 0.0  ;;  %v254_v62 = vmax.f32 %v230_v58, 0.0 }
  0xf8   :  { %264 = vst [vmem:[#allocation2 + $0x38] sm:$0xff] %v248_v59  ;;  %272 = vst [vmem:[#allocation2 + $0x78] sm:$0xff] %v256_v60 }
  0xf9   :  { %262 = vst [vmem:[#allocation2 + $0x28] sm:$0xff] %v246_v61  ;;  %270 = vst [vmem:[#allocation2 + $0x68] sm:$0xff] %v254_v62 }
  0xfa   :  { %389 = shalt.err (!%p386_p4)
}
  0xfb   :  { %s390_s15 = scalar_lea.hbm %s490_s3, 2048 }
  0xfc   :  { %p391_p5 = scmp.ne.s32.totalorder %s490_s3, %s390_s15  ;;  %p394_p6 = scmp.lt.u32.totalorder %s390_s15, %s490_s3 }
  0xfe   :  { %p396_p7 = pnand %p394_p6, %p391_p5 }
 0x100   :  { %399 = shalt.err (!%p396_p7)
}
 0x101   :  { %s403_s20 = smov 128   ;;  %s404_s21 = smov 8  }
 0x102   :  { %284 = dma.vmem_to_hbm [thread:$0]  %s279_s2, 2048, %s490_s3, [#allocation3], %s403_s20, %s403_s20, %s404_s21  }
 0x103   :  { %400 = dma.done.wait [#allocation3], 2048  }
 0x104   :  { %401 = vsyncadd [#allocation3], 4294965248 }
 0x105   :  { %288 = vsyncpa [#allocation3], 1 }

</bundles_post_ra>
